<compile_context>
chip_gen: v5e
topology: v5e:2x2
jax: 0.10.0
libtpu: 0.0.40
codegen_flags: <defaults>
</compile_context>

<pallas_src>
import functools

import jax
import jax.numpy as jnp
import numpy as np
from jax.experimental import pallas as pl
from jax.experimental.pallas import tpu as pltpu


def _ru(a, b):
    return -(-a // b) * b


def _cdiv(a, b):
    return -(-a // b)


# -----------------------------------------------------------------------------
# Fused im2col + conv kernel.
#   w_ref: (kh*kw, Cout, Cin) bf16  -- mixed weights, resident for whole grid
#   x_ref: (Hp, Cin, Wp)      bf16  -- one padded image, resident per batch elt
#   o_ref: (Cout, th, Wo)           -- one output row-tile
# For every output row t and tap (i, j) the needed input row plane
# x_pad[:, ho*sh + i*dh, :] is a (Cin, Wp) slab whose natural VMEM layout
# (Cin sublanes, W lanes) is exactly the MXU rhs layout, so each tap is a
# plain 2-D dot with f32 accumulation.
# -----------------------------------------------------------------------------
def _fused_conv_kernel(w_ref, x_ref, o_ref, *, kh, kw, th, wo,
                       sh, sw, dh, dw, row_max):
    base = pl.program_id(1) * (th * sh)

    # Hoist the kh*kw weight taps (each (Cout, Cin)) out of the row loop.
    w_taps = [w_ref[q] for q in range(kh * kw)]

    for t in range(th):                              # static unroll (th <= 32)
        acc = None
        for i in range(kh):
            # Clamp keeps reads in-bounds for the ragged last row-tile; the
            # corresponding output rows are masked away by Pallas on writeback.
            row = jnp.minimum(base + t * sh + i * dh, row_max)
            for j in range(kw):
                c0 = j * dw
                if sw == 1:
                    xrow = x_ref[row, :, pl.ds(c0, wo)]           # (Cin, Wo)
                else:
                    xrow = x_ref[row, :, pl.ds(c0, wo, sw)]       # strided cols
                part = jnp.dot(w_taps[i * kw + j], xrow,
                               preferred_element_type=jnp.float32)
                acc = part if acc is None else acc + part
        o_ref[:, t, :] = acc.astype(o_ref.dtype)


# -----------------------------------------------------------------------------
# Tile planning: row-tile height + generation-aware VMEM limit.
# -----------------------------------------------------------------------------
def _plan_tiles(n_batch, c_out, c_in, h_out, w_out, hp, wp, kh_kw,
                *, th_max=32, min_programs=4):
    try:
        vmem_cap = int(pltpu.get_tpu_info().vmem_capacity_bytes)
    except Exception:                      # fallback: assume the smallest (v7x)
        vmem_cap = 64 * 1024 * 1024

    # Largest row tile that is a multiple of 8 sublanes (or the full height).
    if h_out <= 8:
        th = h_out
    else:
        th = min((h_out // 8) * 8, _ru(th_max, 8))
        # Guarantee enough grid programs so v7x's two TensorCores both get work.
        while th > 8 and n_batch * _cdiv(h_out, th) < min_programs:
            th -= 8

    # VMEM bookkeeping with (8, 128) sublane/lane padding and double buffers.
    x_bytes = hp * _ru(c_in, 8) * _ru(wp, 128) * 2            # bf16 image
    w_bytes = kh_kw * _ru(c_out, 8) * _ru(c_in, 128) * 2      # bf16 weights
    o_bytes = c_out * _ru(max(th, 1), 8) * _ru(w_out, 128) * 4
    need = 2 * (x_bytes + w_bytes + o_bytes)
    vmem_limit = int(min(max(need + (4 << 20), 16 << 20), (vmem_cap * 3) // 4))
    return th, vmem_limit


# -----------------------------------------------------------------------------
# Wrapper: controlledConv2.forward(input, alpha=None) with my_bn=None.
# -----------------------------------------------------------------------------
@functools.partial(jax.jit, static_argnames=("weight_shape", "stride", "padding",
                                             "dilation", "out_dtype", "th_max",
                                             "min_programs"))
def controlled_conv2_forward(x, P, w_flat, *, weight_shape,
                             stride=(1, 1), padding=(0, 0), dilation=(1, 1),
                             out_dtype=jnp.float32, th_max=32, min_programs=4):
    c_out, c_in, kh, kw = weight_shape
    sh, sw = stride
    ph, pw = padding
    dh, dw = dilation
    n, _, h, w = x.shape
    h_out = (h + 2 * ph - dh * (kh - 1) - 1) // sh + 1
    w_out = (w + 2 * pw - dw * (kw - 1) - 1) // sw + 1
    hp, wp = h + 2 * ph, w + 2 * pw

    # ---- weight mix (tiny: Cout x Cout @ Cout x K) in plain XLA -------------
    new_w = jnp.matmul(P, w_flat, precision=jax.lax.Precision.HIGHEST)
    new_w = new_w.reshape(c_out, c_in, kh, kw).transpose(2, 3, 0, 1)
    new_w = new_w.reshape(kh * kw, c_out, c_in).astype(jnp.bfloat16)

    # ---- input prep: single pad + transpose pass to (N, Hp, Cin, Wp) bf16 ---
    xp = jnp.pad(x.astype(jnp.bfloat16), ((0, 0), (0, 0), (ph, ph), (pw, pw)))
    xt = xp.transpose(0, 2, 1, 3)                         # (N, Hp, Cin, Wp)

    th, vmem_limit = _plan_tiles(n, c_out, c_in, h_out, w_out, hp, wp, kh * kw,
                                 th_max=th_max, min_programs=min_programs)
    n_row_tiles = _cdiv(h_out, th)

    kernel = functools.partial(_fused_conv_kernel, kh=kh, kw=kw, th=th, wo=w_out,
                               sh=sh, sw=sw, dh=dh, dw=dw, row_max=hp - 1)

    flops = 2 * n * c_out * c_in * kh * kw * h_out * w_out
    bytes_accessed = (xt.size * 2 + new_w.size * 2
                      + n * c_out * h_out * w_out * jnp.dtype(out_dtype).itemsize)

    out = pl.pallas_call(
        kernel,
        out_shape=jax.ShapeDtypeStruct((n, c_out, h_out, w_out), out_dtype),
        grid=(n, n_row_tiles),
        in_specs=[
            # mixed weights: resident across the whole grid
            pl.BlockSpec((kh * kw, c_out, c_in), lambda b, r: (0, 0, 0)),
            # padded image: resident across all row-tiles of one batch element
            pl.BlockSpec((None, hp, c_in, wp), lambda b, r: (b, 0, 0, 0)),
        ],
        out_specs=pl.BlockSpec((None, c_out, th, w_out), lambda b, r: (b, 0, r, 0)),
        compiler_params=pltpu.CompilerParams(
            dimension_semantics=("parallel", "parallel"),
            vmem_limit_bytes=vmem_limit),
        cost_estimate=pl.CostEstimate(flops=int(flops), transcendentals=0,
                                      bytes_accessed=int(bytes_accessed)),
    )(new_w, xt)
    return out


if __name__ == "__main__":
    # ---- deterministic parameter / input construction -----------------------
    key = jax.random.PRNGKey(0)
    k_x, k_w, k_p = jax.random.split(key, 3)

    # conv = nn.Conv2d(in_channels=4, out_channels=8, kernel_size=3,
    #                  stride=1, padding=1, dilation=1, bias=False)
    N, C_in, H, W = 2, 4, 16, 16
    C_out, KH, KW = 8, 3, 3
    stride, padding, dilation = (1, 1), (1, 1), (1, 1)
    weight_shape = (C_out, C_in, KH, KW)

    x = jax.random.normal(k_x, (N, C_in, H, W), dtype=jnp.float32)
    conv_weight = jax.random.normal(k_w, weight_shape, dtype=jnp.float32) * 0.1
    w_flat = conv_weight.reshape(C_out, -1)                 # (Cout, Cin*kh*kw)

    # P = eye(Cout) + eye(Cout) * randn(Cout, Cout) / Cout   (as in __init__)
    eye = jnp.eye(C_out, dtype=jnp.float32)
    P = eye + eye * jax.random.normal(k_p, (C_out, C_out), dtype=jnp.float32) / C_out

    # ---- run the fused Pallas kernel ----------------------------------------
    y = controlled_conv2_forward(x, P, w_flat, weight_shape=weight_shape,
                                 stride=stride, padding=padding,
                                 dilation=dilation)
    y = jax.block_until_ready(y)

    # ---- reference: same bf16 operand casts + f32 accumulation --------------
    new_w_ref = jnp.matmul(P, w_flat, precision=jax.lax.Precision.HIGHEST)
    new_w_ref = new_w_ref.astype(jnp.bfloat16).astype(jnp.float32)
    y_ref = jax.lax.conv_general_dilated(
        x.astype(jnp.bfloat16).astype(jnp.float32),
        new_w_ref.reshape(weight_shape),
        window_strides=stride,
        padding=[(padding[0], padding[0]), (padding[1], padding[1])],
        rhs_dilation=dilation,
        dimension_numbers=("NCHW", "OIHW", "NCHW"),
        precision=jax.lax.Precision.HIGHEST)
    np.testing.assert_allclose(np.asarray(y), np.asarray(y_ref),
                               rtol=1e-2, atol=1e-2)

    print("KERNEL_OK")
</pallas_src>

<mosaic_0001>
module attributes {stable_mosaic.version = 11 : i64} {
  func.func @_fused_conv_kernel(%arg0: i32, %arg1: i32, %arg2: memref<9x8x4xbf16, #tpu.memory_space<vmem>>, %arg3: memref<1x18x4x18xbf16, #tpu.memory_space<vmem>>, %arg4: memref<1x8x8x16xf32, #tpu.memory_space<vmem>>) attributes {dimension_semantics = [#tpu.dimension_semantics<parallel>, #tpu.dimension_semantics<parallel>], iteration_bounds = array<i64: 2, 2>, scalar_prefetch = 0 : i64, scratch_operands = 0 : i64, tpu.core_type = #tpu.core_type<tc>, window_params = [{pipeline_mode = #tpu.pipeline_mode<synchronous>, transform_indices = @transform_0, window_bounds = array<i64: 9, 8, 4>}, {transform_indices = @transform_1, window_bounds = array<i64: 1, 18, 4, 18>}, {transform_indices = @transform_2, window_bounds = array<i64: 1, 8, 8, 16>}]} {
    %c8_i32 = arith.constant 8 : i32
    %0 = arith.muli %arg1, %c8_i32 : i32
    %c0 = arith.constant 0 : index
    %c0_0 = arith.constant 0 : index
    %c0_1 = arith.constant 0 : index
    %1 = vector.load %arg2[%c0, %c0_0, %c0_1] : memref<9x8x4xbf16, #tpu.memory_space<vmem>>, vector<1x8x4xbf16>
    %2 = vector.shape_cast %1 : vector<1x8x4xbf16> to vector<8x4xbf16>
    %c1 = arith.constant 1 : index
    %c0_2 = arith.constant 0 : index
    %c0_3 = arith.constant 0 : index
    %3 = vector.load %arg2[%c1, %c0_2, %c0_3] : memref<9x8x4xbf16, #tpu.memory_space<vmem>>, vector<1x8x4xbf16>
    %4 = vector.shape_cast %3 : vector<1x8x4xbf16> to vector<8x4xbf16>
    %c2 = arith.constant 2 : index
    %c0_4 = arith.constant 0 : index
    %c0_5 = arith.constant 0 : index
    %5 = vector.load %arg2[%c2, %c0_4, %c0_5] : memref<9x8x4xbf16, #tpu.memory_space<vmem>>, vector<1x8x4xbf16>
    %6 = vector.shape_cast %5 : vector<1x8x4xbf16> to vector<8x4xbf16>
    %c3 = arith.constant 3 : index
    %c0_6 = arith.constant 0 : index
    %c0_7 = arith.constant 0 : index
    %7 = vector.load %arg2[%c3, %c0_6, %c0_7] : memref<9x8x4xbf16, #tpu.memory_space<vmem>>, vector<1x8x4xbf16>
    %8 = vector.shape_cast %7 : vector<1x8x4xbf16> to vector<8x4xbf16>
    %c4 = arith.constant 4 : index
    %c0_8 = arith.constant 0 : index
    %c0_9 = arith.constant 0 : index
    %9 = vector.load %arg2[%c4, %c0_8, %c0_9] : memref<9x8x4xbf16, #tpu.memory_space<vmem>>, vector<1x8x4xbf16>
    %10 = vector.shape_cast %9 : vector<1x8x4xbf16> to vector<8x4xbf16>
    %c5 = arith.constant 5 : index
    %c0_10 = arith.constant 0 : index
    %c0_11 = arith.constant 0 : index
    %11 = vector.load %arg2[%c5, %c0_10, %c0_11] : memref<9x8x4xbf16, #tpu.memory_space<vmem>>, vector<1x8x4xbf16>
    %12 = vector.shape_cast %11 : vector<1x8x4xbf16> to vector<8x4xbf16>
    %c6 = arith.constant 6 : index
    %c0_12 = arith.constant 0 : index
    %c0_13 = arith.constant 0 : index
    %13 = vector.load %arg2[%c6, %c0_12, %c0_13] : memref<9x8x4xbf16, #tpu.memory_space<vmem>>, vector<1x8x4xbf16>
    %14 = vector.shape_cast %13 : vector<1x8x4xbf16> to vector<8x4xbf16>
    %c7 = arith.constant 7 : index
    %c0_14 = arith.constant 0 : index
    %c0_15 = arith.constant 0 : index
    %15 = vector.load %arg2[%c7, %c0_14, %c0_15] : memref<9x8x4xbf16, #tpu.memory_space<vmem>>, vector<1x8x4xbf16>
    %16 = vector.shape_cast %15 : vector<1x8x4xbf16> to vector<8x4xbf16>
    %c8 = arith.constant 8 : index
    %c0_16 = arith.constant 0 : index
    %c0_17 = arith.constant 0 : index
    %17 = vector.load %arg2[%c8, %c0_16, %c0_17] : memref<9x8x4xbf16, #tpu.memory_space<vmem>>, vector<1x8x4xbf16>
    %18 = vector.shape_cast %17 : vector<1x8x4xbf16> to vector<8x4xbf16>
    %c0_i32 = arith.constant 0 : i32
    %19 = arith.addi %0, %c0_i32 : i32
    %c0_i32_18 = arith.constant 0 : i32
    %20 = arith.addi %19, %c0_i32_18 : i32
    %c17_i32 = arith.constant 17 : i32
    %21 = arith.minsi %20, %c17_i32 : i32
    %c0_19 = arith.constant 0 : index
    %22 = arith.index_cast %21 : i32 to index
    %c0_20 = arith.constant 0 : index
    %c0_21 = arith.constant 0 : index
    %23 = vector.load %arg3[%c0_19, %22, %c0_20, %c0_21] : memref<1x18x4x18xbf16, #tpu.memory_space<vmem>>, vector<1x1x4x16xbf16>
    %24 = vector.shape_cast %23 : vector<1x1x4x16xbf16> to vector<4x16xbf16>
    %cst = arith.constant dense<0.000000e+00> : vector<8x16xf32>
    %25 = tpu.matmul %2, %24, %cst {dimension_numbers = #tpu.dot_dimension_numbers<[1], [0], [0], [1], [0, 0, 1, 1], [], []>} : vector<8x4xbf16>, vector<4x16xbf16>, vector<8x16xf32> -> vector<8x16xf32>
    %c0_22 = arith.constant 0 : index
    %26 = arith.index_cast %21 : i32 to index
    %c0_23 = arith.constant 0 : index
    %c1_24 = arith.constant 1 : index
    %27 = vector.load %arg3[%c0_22, %26, %c0_23, %c1_24] : memref<1x18x4x18xbf16, #tpu.memory_space<vmem>>, vector<1x1x4x16xbf16>
    %28 = vector.shape_cast %27 : vector<1x1x4x16xbf16> to vector<4x16xbf16>
    %cst_25 = arith.constant dense<0.000000e+00> : vector<8x16xf32>
    %29 = tpu.matmul %4, %28, %cst_25 {dimension_numbers = #tpu.dot_dimension_numbers<[1], [0], [0], [1], [0, 0, 1, 1], [], []>} : vector<8x4xbf16>, vector<4x16xbf16>, vector<8x16xf32> -> vector<8x16xf32>
    %30 = arith.addf %25, %29 : vector<8x16xf32>
    %c0_26 = arith.constant 0 : index
    %31 = arith.index_cast %21 : i32 to index
    %c0_27 = arith.constant 0 : index
    %c2_28 = arith.constant 2 : index
    %32 = vector.load %arg3[%c0_26, %31, %c0_27, %c2_28] : memref<1x18x4x18xbf16, #tpu.memory_space<vmem>>, vector<1x1x4x16xbf16>
    %33 = vector.shape_cast %32 : vector<1x1x4x16xbf16> to vector<4x16xbf16>
    %cst_29 = arith.constant dense<0.000000e+00> : vector<8x16xf32>
    %34 = tpu.matmul %6, %33, %cst_29 {dimension_numbers = #tpu.dot_dimension_numbers<[1], [0], [0], [1], [0, 0, 1, 1], [], []>} : vector<8x4xbf16>, vector<4x16xbf16>, vector<8x16xf32> -> vector<8x16xf32>
    %35 = arith.addf %30, %34 : vector<8x16xf32>
    %c0_i32_30 = arith.constant 0 : i32
    %36 = arith.addi %0, %c0_i32_30 : i32
    %c1_i32 = arith.constant 1 : i32
    %37 = arith.addi %36, %c1_i32 : i32
    %c17_i32_31 = arith.constant 17 : i32
    %38 = arith.minsi %37, %c17_i32_31 : i32
    %c0_32 = arith.constant 0 : index
    %39 = arith.index_cast %38 : i32 to index
    %c0_33 = arith.constant 0 : index
    %c0_34 = arith.constant 0 : index
    %40 = vector.load %arg3[%c0_32, %39, %c0_33, %c0_34] : memref<1x18x4x18xbf16, #tpu.memory_space<vmem>>, vector<1x1x4x16xbf16>
    %41 = vector.shape_cast %40 : vector<1x1x4x16xbf16> to vector<4x16xbf16>
    %cst_35 = arith.constant dense<0.000000e+00> : vector<8x16xf32>
    %42 = tpu.matmul %8, %41, %cst_35 {dimension_numbers = #tpu.dot_dimension_numbers<[1], [0], [0], [1], [0, 0, 1, 1], [], []>} : vector<8x4xbf16>, vector<4x16xbf16>, vector<8x16xf32> -> vector<8x16xf32>
    %43 = arith.addf %35, %42 : vector<8x16xf32>
    %c0_36 = arith.constant 0 : index
    %44 = arith.index_cast %38 : i32 to index
    %c0_37 = arith.constant 0 : index
    %c1_38 = arith.constant 1 : index
    %45 = vector.load %arg3[%c0_36, %44, %c0_37, %c1_38] : memref<1x18x4x18xbf16, #tpu.memory_space<vmem>>, vector<1x1x4x16xbf16>
    %46 = vector.shape_cast %45 : vector<1x1x4x16xbf16> to vector<4x16xbf16>
    %cst_39 = arith.constant dense<0.000000e+00> : vector<8x16xf32>
    %47 = tpu.matmul %10, %46, %cst_39 {dimension_numbers = #tpu.dot_dimension_numbers<[1], [0], [0], [1], [0, 0, 1, 1], [], []>} : vector<8x4xbf16>, vector<4x16xbf16>, vector<8x16xf32> -> vector<8x16xf32>
    %48 = arith.addf %43, %47 : vector<8x16xf32>
    %c0_40 = arith.constant 0 : index
    %49 = arith.index_cast %38 : i32 to index
    %c0_41 = arith.constant 0 : index
    %c2_42 = arith.constant 2 : index
    %50 = vector.load %arg3[%c0_40, %49, %c0_41, %c2_42] : memref<1x18x4x18xbf16, #tpu.memory_space<vmem>>, vector<1x1x4x16xbf16>
    %51 = vector.shape_cast %50 : vector<1x1x4x16xbf16> to vector<4x16xbf16>
    %cst_43 = arith.constant dense<0.000000e+00> : vector<8x16xf32>
    %52 = tpu.matmul %12, %51, %cst_43 {dimension_numbers = #tpu.dot_dimension_numbers<[1], [0], [0], [1], [0, 0, 1, 1], [], []>} : vector<8x4xbf16>, vector<4x16xbf16>, vector<8x16xf32> -> vector<8x16xf32>
    %53 = arith.addf %48, %52 : vector<8x16xf32>
    %c0_i32_44 = arith.constant 0 : i32
    %54 = arith.addi %0, %c0_i32_44 : i32
    %c2_i32 = arith.constant 2 : i32
    %55 = arith.addi %54, %c2_i32 : i32
    %c17_i32_45 = arith.constant 17 : i32
    %56 = arith.minsi %55, %c17_i32_45 : i32
    %c0_46 = arith.constant 0 : index
    %57 = arith.index_cast %56 : i32 to index
    %c0_47 = arith.constant 0 : index
    %c0_48 = arith.constant 0 : index
    %58 = vector.load %arg3[%c0_46, %57, %c0_47, %c0_48] : memref<1x18x4x18xbf16, #tpu.memory_space<vmem>>, vector<1x1x4x16xbf16>
    %59 = vector.shape_cast %58 : vector<1x1x4x16xbf16> to vector<4x16xbf16>
    %cst_49 = arith.constant dense<0.000000e+00> : vector<8x16xf32>
    %60 = tpu.matmul %14, %59, %cst_49 {dimension_numbers = #tpu.dot_dimension_numbers<[1], [0], [0], [1], [0, 0, 1, 1], [], []>} : vector<8x4xbf16>, vector<4x16xbf16>, vector<8x16xf32> -> vector<8x16xf32>
    %61 = arith.addf %53, %60 : vector<8x16xf32>
    %c0_50 = arith.constant 0 : index
    %62 = arith.index_cast %56 : i32 to index
    %c0_51 = arith.constant 0 : index
    %c1_52 = arith.constant 1 : index
    %63 = vector.load %arg3[%c0_50, %62, %c0_51, %c1_52] : memref<1x18x4x18xbf16, #tpu.memory_space<vmem>>, vector<1x1x4x16xbf16>
    %64 = vector.shape_cast %63 : vector<1x1x4x16xbf16> to vector<4x16xbf16>
    %cst_53 = arith.constant dense<0.000000e+00> : vector<8x16xf32>
    %65 = tpu.matmul %16, %64, %cst_53 {dimension_numbers = #tpu.dot_dimension_numbers<[1], [0], [0], [1], [0, 0, 1, 1], [], []>} : vector<8x4xbf16>, vector<4x16xbf16>, vector<8x16xf32> -> vector<8x16xf32>
    %66 = arith.addf %61, %65 : vector<8x16xf32>
    %c0_54 = arith.constant 0 : index
    %67 = arith.index_cast %56 : i32 to index
    %c0_55 = arith.constant 0 : index
    %c2_56 = arith.constant 2 : index
    %68 = vector.load %arg3[%c0_54, %67, %c0_55, %c2_56] : memref<1x18x4x18xbf16, #tpu.memory_space<vmem>>, vector<1x1x4x16xbf16>
    %69 = vector.shape_cast %68 : vector<1x1x4x16xbf16> to vector<4x16xbf16>
    %cst_57 = arith.constant dense<0.000000e+00> : vector<8x16xf32>
    %70 = tpu.matmul %18, %69, %cst_57 {dimension_numbers = #tpu.dot_dimension_numbers<[1], [0], [0], [1], [0, 0, 1, 1], [], []>} : vector<8x4xbf16>, vector<4x16xbf16>, vector<8x16xf32> -> vector<8x16xf32>
    %71 = arith.addf %66, %70 : vector<8x16xf32>
    %c0_58 = arith.constant 0 : index
    %c0_59 = arith.constant 0 : index
    %c0_60 = arith.constant 0 : index
    %c0_61 = arith.constant 0 : index
    %72 = vector.load %arg4[%c0_58, %c0_59, %c0_60, %c0_61] : memref<1x8x8x16xf32, #tpu.memory_space<vmem>>, vector<1x8x1x16xf32>
    %73 = vector.shape_cast %72 : vector<1x8x1x16xf32> to vector<8x16xf32>
    %74 = vector.shape_cast %71 : vector<8x16xf32> to vector<1x8x1x16xf32>
    tpu.vector_store %arg4[%c0_58, %c0_59, %c0_60, %c0_61], %74 {strides = array<i32>} : memref<1x8x8x16xf32, #tpu.memory_space<vmem>>, vector<1x8x1x16xf32>,
    %c1_i32_62 = arith.constant 1 : i32
    %75 = arith.addi %0, %c1_i32_62 : i32
    %c0_i32_63 = arith.constant 0 : i32
    %76 = arith.addi %75, %c0_i32_63 : i32
    %c17_i32_64 = arith.constant 17 : i32
    %77 = arith.minsi %76, %c17_i32_64 : i32
    %c0_65 = arith.constant 0 : index
    %78 = arith.index_cast %77 : i32 to index
    %c0_66 = arith.constant 0 : index
    %c0_67 = arith.constant 0 : index
    %79 = vector.load %arg3[%c0_65, %78, %c0_66, %c0_67] : memref<1x18x4x18xbf16, #tpu.memory_space<vmem>>, vector<1x1x4x16xbf16>
    %80 = vector.shape_cast %79 : vector<1x1x4x16xbf16> to vector<4x16xbf16>
    %cst_68 = arith.constant dense<0.000000e+00> : vector<8x16xf32>
    %81 = tpu.matmul %2, %80, %cst_68 {dimension_numbers = #tpu.dot_dimension_numbers<[1], [0], [0], [1], [0, 0, 1, 1], [], []>} : vector<8x4xbf16>, vector<4x16xbf16>, vector<8x16xf32> -> vector<8x16xf32>
    %c0_69 = arith.constant 0 : index
    %82 = arith.index_cast %77 : i32 to index
    %c0_70 = arith.constant 0 : index
    %c1_71 = arith.constant 1 : index
    %83 = vector.load %arg3[%c0_69, %82, %c0_70, %c1_71] : memref<1x18x4x18xbf16, #tpu.memory_space<vmem>>, vector<1x1x4x16xbf16>
    %84 = vector.shape_cast %83 : vector<1x1x4x16xbf16> to vector<4x16xbf16>
    %cst_72 = arith.constant dense<0.000000e+00> : vector<8x16xf32>
    %85 = tpu.matmul %4, %84, %cst_72 {dimension_numbers = #tpu.dot_dimension_numbers<[1], [0], [0], [1], [0, 0, 1, 1], [], []>} : vector<8x4xbf16>, vector<4x16xbf16>, vector<8x16xf32> -> vector<8x16xf32>
    %86 = arith.addf %81, %85 : vector<8x16xf32>
    %c0_73 = arith.constant 0 : index
    %87 = arith.index_cast %77 : i32 to index
    %c0_74 = arith.constant 0 : index
    %c2_75 = arith.constant 2 : index
    %88 = vector.load %arg3[%c0_73, %87, %c0_74, %c2_75] : memref<1x18x4x18xbf16, #tpu.memory_space<vmem>>, vector<1x1x4x16xbf16>
    %89 = vector.shape_cast %88 : vector<1x1x4x16xbf16> to vector<4x16xbf16>
    %cst_76 = arith.constant dense<0.000000e+00> : vector<8x16xf32>
    %90 = tpu.matmul %6, %89, %cst_76 {dimension_numbers = #tpu.dot_dimension_numbers<[1], [0], [0], [1], [0, 0, 1, 1], [], []>} : vector<8x4xbf16>, vector<4x16xbf16>, vector<8x16xf32> -> vector<8x16xf32>
    %91 = arith.addf %86, %90 : vector<8x16xf32>
    %c1_i32_77 = arith.constant 1 : i32
    %92 = arith.addi %0, %c1_i32_77 : i32
    %c1_i32_78 = arith.constant 1 : i32
    %93 = arith.addi %92, %c1_i32_78 : i32
    %c17_i32_79 = arith.constant 17 : i32
    %94 = arith.minsi %93, %c17_i32_79 : i32
    %c0_80 = arith.constant 0 : index
    %95 = arith.index_cast %94 : i32 to index
    %c0_81 = arith.constant 0 : index
    %c0_82 = arith.constant 0 : index
    %96 = vector.load %arg3[%c0_80, %95, %c0_81, %c0_82] : memref<1x18x4x18xbf16, #tpu.memory_space<vmem>>, vector<1x1x4x16xbf16>
    %97 = vector.shape_cast %96 : vector<1x1x4x16xbf16> to vector<4x16xbf16>
    %cst_83 = arith.constant dense<0.000000e+00> : vector<8x16xf32>
    %98 = tpu.matmul %8, %97, %cst_83 {dimension_numbers = #tpu.dot_dimension_numbers<[1], [0], [0], [1], [0, 0, 1, 1], [], []>} : vector<8x4xbf16>, vector<4x16xbf16>, vector<8x16xf32> -> vector<8x16xf32>
    %99 = arith.addf %91, %98 : vector<8x16xf32>
    %c0_84 = arith.constant 0 : index
    %100 = arith.index_cast %94 : i32 to index
    %c0_85 = arith.constant 0 : index
    %c1_86 = arith.constant 1 : index
    %101 = vector.load %arg3[%c0_84, %100, %c0_85, %c1_86] : memref<1x18x4x18xbf16, #tpu.memory_space<vmem>>, vector<1x1x4x16xbf16>
    %102 = vector.shape_cast %101 : vector<1x1x4x16xbf16> to vector<4x16xbf16>
    %cst_87 = arith.constant dense<0.000000e+00> : vector<8x16xf32>
    %103 = tpu.matmul %10, %102, %cst_87 {dimension_numbers = #tpu.dot_dimension_numbers<[1], [0], [0], [1], [0, 0, 1, 1], [], []>} : vector<8x4xbf16>, vector<4x16xbf16>, vector<8x16xf32> -> vector<8x16xf32>
    %104 = arith.addf %99, %103 : vector<8x16xf32>
    %c0_88 = arith.constant 0 : index
    %105 = arith.index_cast %94 : i32 to index
    %c0_89 = arith.constant 0 : index
    %c2_90 = arith.constant 2 : index
    %106 = vector.load %arg3[%c0_88, %105, %c0_89, %c2_90] : memref<1x18x4x18xbf16, #tpu.memory_space<vmem>>, vector<1x1x4x16xbf16>
    %107 = vector.shape_cast %106 : vector<1x1x4x16xbf16> to vector<4x16xbf16>
    %cst_91 = arith.constant dense<0.000000e+00> : vector<8x16xf32>
    %108 = tpu.matmul %12, %107, %cst_91 {dimension_numbers = #tpu.dot_dimension_numbers<[1], [0], [0], [1], [0, 0, 1, 1], [], []>} : vector<8x4xbf16>, vector<4x16xbf16>, vector<8x16xf32> -> vector<8x16xf32>
    %109 = arith.addf %104, %108 : vector<8x16xf32>
    %c1_i32_92 = arith.constant 1 : i32
    %110 = arith.addi %0, %c1_i32_92 : i32
    %c2_i32_93 = arith.constant 2 : i32
    %111 = arith.addi %110, %c2_i32_93 : i32
    %c17_i32_94 = arith.constant 17 : i32
    %112 = arith.minsi %111, %c17_i32_94 : i32
    %c0_95 = arith.constant 0 : index
    %113 = arith.index_cast %112 : i32 to index
    %c0_96 = arith.constant 0 : index
    %c0_97 = arith.constant 0 : index
    %114 = vector.load %arg3[%c0_95, %113, %c0_96, %c0_97] : memref<1x18x4x18xbf16, #tpu.memory_space<vmem>>, vector<1x1x4x16xbf16>
    %115 = vector.shape_cast %114 : vector<1x1x4x16xbf16> to vector<4x16xbf16>
    %cst_98 = arith.constant dense<0.000000e+00> : vector<8x16xf32>
    %116 = tpu.matmul %14, %115, %cst_98 {dimension_numbers = #tpu.dot_dimension_numbers<[1], [0], [0], [1], [0, 0, 1, 1], [], []>} : vector<8x4xbf16>, vector<4x16xbf16>, vector<8x16xf32> -> vector<8x16xf32>
    %117 = arith.addf %109, %116 : vector<8x16xf32>
    %c0_99 = arith.constant 0 : index
    %118 = arith.index_cast %112 : i32 to index
    %c0_100 = arith.constant 0 : index
    %c1_101 = arith.constant 1 : index
    %119 = vector.load %arg3[%c0_99, %118, %c0_100, %c1_101] : memref<1x18x4x18xbf16, #tpu.memory_space<vmem>>, vector<1x1x4x16xbf16>
    %120 = vector.shape_cast %119 : vector<1x1x4x16xbf16> to vector<4x16xbf16>
    %cst_102 = arith.constant dense<0.000000e+00> : vector<8x16xf32>
    %121 = tpu.matmul %16, %120, %cst_102 {dimension_numbers = #tpu.dot_dimension_numbers<[1], [0], [0], [1], [0, 0, 1, 1], [], []>} : vector<8x4xbf16>, vector<4x16xbf16>, vector<8x16xf32> -> vector<8x16xf32>
    %122 = arith.addf %117, %121 : vector<8x16xf32>
    %c0_103 = arith.constant 0 : index
    %123 = arith.index_cast %112 : i32 to index
    %c0_104 = arith.constant 0 : index
    %c2_105 = arith.constant 2 : index
    %124 = vector.load %arg3[%c0_103, %123, %c0_104, %c2_105] : memref<1x18x4x18xbf16, #tpu.memory_space<vmem>>, vector<1x1x4x16xbf16>
    %125 = vector.shape_cast %124 : vector<1x1x4x16xbf16> to vector<4x16xbf16>
    %cst_106 = arith.constant dense<0.000000e+00> : vector<8x16xf32>
    %126 = tpu.matmul %18, %125, %cst_106 {dimension_numbers = #tpu.dot_dimension_numbers<[1], [0], [0], [1], [0, 0, 1, 1], [], []>} : vector<8x4xbf16>, vector<4x16xbf16>, vector<8x16xf32> -> vector<8x16xf32>
    %127 = arith.addf %122, %126 : vector<8x16xf32>
    %c0_107 = arith.constant 0 : index
    %c0_108 = arith.constant 0 : index
    %c1_109 = arith.constant 1 : index
    %c0_110 = arith.constant 0 : index
    %128 = vector.load %arg4[%c0_107, %c0_108, %c1_109, %c0_110] : memref<1x8x8x16xf32, #tpu.memory_space<vmem>>, vector<1x8x1x16xf32>
    %129 = vector.shape_cast %128 : vector<1x8x1x16xf32> to vector<8x16xf32>
    %130 = vector.shape_cast %127 : vector<8x16xf32> to vector<1x8x1x16xf32>
    tpu.vector_store %arg4[%c0_107, %c0_108, %c1_109, %c0_110], %130 {strides = array<i32>} : memref<1x8x8x16xf32, #tpu.memory_space<vmem>>, vector<1x8x1x16xf32>,
    %c2_i32_111 = arith.constant 2 : i32
    %131 = arith.addi %0, %c2_i32_111 : i32
    %c0_i32_112 = arith.constant 0 : i32
    %132 = arith.addi %131, %c0_i32_112 : i32
    %c17_i32_113 = arith.constant 17 : i32
    %133 = arith.minsi %132, %c17_i32_113 : i32
    %c0_114 = arith.constant 0 : index
    %134 = arith.index_cast %133 : i32 to index
    %c0_115 = arith.constant 0 : index
    %c0_116 = arith.constant 0 : index
    %135 = vector.load %arg3[%c0_114, %134, %c0_115, %c0_116] : memref<1x18x4x18xbf16, #tpu.memory_space<vmem>>, vector<1x1x4x16xbf16>
    %136 = vector.shape_cast %135 : vector<1x1x4x16xbf16> to vector<4x16xbf16>
    %cst_117 = arith.constant dense<0.000000e+00> : vector<8x16xf32>
    %137 = tpu.matmul %2, %136, %cst_117 {dimension_numbers = #tpu.dot_dimension_numbers<[1], [0], [0], [1], [0, 0, 1, 1], [], []>} : vector<8x4xbf16>, vector<4x16xbf16>, vector<8x16xf32> -> vector<8x16xf32>
    %c0_118 = arith.constant 0 : index
    %138 = arith.index_cast %133 : i32 to index
    %c0_119 = arith.constant 0 : index
    %c1_120 = arith.constant 1 : index
    %139 = vector.load %arg3[%c0_118, %138, %c0_119, %c1_120] : memref<1x18x4x18xbf16, #tpu.memory_space<vmem>>, vector<1x1x4x16xbf16>
    %140 = vector.shape_cast %139 : vector<1x1x4x16xbf16> to vector<4x16xbf16>
    %cst_121 = arith.constant dense<0.000000e+00> : vector<8x16xf32>
    %141 = tpu.matmul %4, %140, %cst_121 {dimension_numbers = #tpu.dot_dimension_numbers<[1], [0], [0], [1], [0, 0, 1, 1], [], []>} : vector<8x4xbf16>, vector<4x16xbf16>, vector<8x16xf32> -> vector<8x16xf32>
    %142 = arith.addf %137, %141 : vector<8x16xf32>
    %c0_122 = arith.constant 0 : index
    %143 = arith.index_cast %133 : i32 to index
    %c0_123 = arith.constant 0 : index
    %c2_124 = arith.constant 2 : index
    %144 = vector.load %arg3[%c0_122, %143, %c0_123, %c2_124] : memref<1x18x4x18xbf16, #tpu.memory_space<vmem>>, vector<1x1x4x16xbf16>
    %145 = vector.shape_cast %144 : vector<1x1x4x16xbf16> to vector<4x16xbf16>
    %cst_125 = arith.constant dense<0.000000e+00> : vector<8x16xf32>
    %146 = tpu.matmul %6, %145, %cst_125 {dimension_numbers = #tpu.dot_dimension_numbers<[1], [0], [0], [1], [0, 0, 1, 1], [], []>} : vector<8x4xbf16>, vector<4x16xbf16>, vector<8x16xf32> -> vector<8x16xf32>
    %147 = arith.addf %142, %146 : vector<8x16xf32>
    %c2_i32_126 = arith.constant 2 : i32
    %148 = arith.addi %0, %c2_i32_126 : i32
    %c1_i32_127 = arith.constant 1 : i32
    %149 = arith.addi %148, %c1_i32_127 : i32
    %c17_i32_128 = arith.constant 17 : i32
    %150 = arith.minsi %149, %c17_i32_128 : i32
    %c0_129 = arith.constant 0 : index
    %151 = arith.index_cast %150 : i32 to index
    %c0_130 = arith.constant 0 : index
    %c0_131 = arith.constant 0 : index
    %152 = vector.load %arg3[%c0_129, %151, %c0_130, %c0_131] : memref<1x18x4x18xbf16, #tpu.memory_space<vmem>>, vector<1x1x4x16xbf16>
    %153 = vector.shape_cast %152 : vector<1x1x4x16xbf16> to vector<4x16xbf16>
    %cst_132 = arith.constant dense<0.000000e+00> : vector<8x16xf32>
    %154 = tpu.matmul %8, %153, %cst_132 {dimension_numbers = #tpu.dot_dimension_numbers<[1], [0], [0], [1], [0, 0, 1, 1], [], []>} : vector<8x4xbf16>, vector<4x16xbf16>, vector<8x16xf32> -> vector<8x16xf32>
    %155 = arith.addf %147, %154 : vector<8x16xf32>
    %c0_133 = arith.constant 0 : index
    %156 = arith.index_cast %150 : i32 to index
    %c0_134 = arith.constant 0 : index
    %c1_135 = arith.constant 1 : index
    %157 = vector.load %arg3[%c0_133, %156, %c0_134, %c1_135] : memref<1x18x4x18xbf16, #tpu.memory_space<vmem>>, vector<1x1x4x16xbf16>
    %158 = vector.shape_cast %157 : vector<1x1x4x16xbf16> to vector<4x16xbf16>
    %cst_136 = arith.constant dense<0.000000e+00> : vector<8x16xf32>
    %159 = tpu.matmul %10, %158, %cst_136 {dimension_numbers = #tpu.dot_dimension_numbers<[1], [0], [0], [1], [0, 0, 1, 1], [], []>} : vector<8x4xbf16>, vector<4x16xbf16>, vector<8x16xf32> -> vector<8x16xf32>
    %160 = arith.addf %155, %159 : vector<8x16xf32>
    %c0_137 = arith.constant 0 : index
    %161 = arith.index_cast %150 : i32 to index
    %c0_138 = arith.constant 0 : index
    %c2_139 = arith.constant 2 : index
    %162 = vector.load %arg3[%c0_137, %161, %c0_138, %c2_139] : memref<1x18x4x18xbf16, #tpu.memory_space<vmem>>, vector<1x1x4x16xbf16>
    %163 = vector.shape_cast %162 : vector<1x1x4x16xbf16> to vector<4x16xbf16>
    %cst_140 = arith.constant dense<0.000000e+00> : vector<8x16xf32>
    %164 = tpu.matmul %12, %163, %cst_140 {dimension_numbers = #tpu.dot_dimension_numbers<[1], [0], [0], [1], [0, 0, 1, 1], [], []>} : vector<8x4xbf16>, vector<4x16xbf16>, vector<8x16xf32> -> vector<8x16xf32>
    %165 = arith.addf %160, %164 : vector<8x16xf32>
    %c2_i32_141 = arith.constant 2 : i32
    %166 = arith.addi %0, %c2_i32_141 : i32
    %c2_i32_142 = arith.constant 2 : i32
    %167 = arith.addi %166, %c2_i32_142 : i32
    %c17_i32_143 = arith.constant 17 : i32
    %168 = arith.minsi %167, %c17_i32_143 : i32
    %c0_144 = arith.constant 0 : index
    %169 = arith.index_cast %168 : i32 to index
    %c0_145 = arith.constant 0 : index
    %c0_146 = arith.constant 0 : index
    %170 = vector.load %arg3[%c0_144, %169, %c0_145, %c0_146] : memref<1x18x4x18xbf16, #tpu.memory_space<vmem>>, vector<1x1x4x16xbf16>
    %171 = vector.shape_cast %170 : vector<1x1x4x16xbf16> to vector<4x16xbf16>
    %cst_147 = arith.constant dense<0.000000e+00> : vector<8x16xf32>
    %172 = tpu.matmul %14, %171, %cst_147 {dimension_numbers = #tpu.dot_dimension_numbers<[1], [0], [0], [1], [0, 0, 1, 1], [], []>} : vector<8x4xbf16>, vector<4x16xbf16>, vector<8x16xf32> -> vector<8x16xf32>
    %173 = arith.addf %165, %172 : vector<8x16xf32>
    %c0_148 = arith.constant 0 : index
    %174 = arith.index_cast %168 : i32 to index
    %c0_149 = arith.constant 0 : index
    %c1_150 = arith.constant 1 : index
    %175 = vector.load %arg3[%c0_148, %174, %c0_149, %c1_150] : memref<1x18x4x18xbf16, #tpu.memory_space<vmem>>, vector<1x1x4x16xbf16>
    %176 = vector.shape_cast %175 : vector<1x1x4x16xbf16> to vector<4x16xbf16>
    %cst_151 = arith.constant dense<0.000000e+00> : vector<8x16xf32>
    %177 = tpu.matmul %16, %176, %cst_151 {dimension_numbers = #tpu.dot_dimension_numbers<[1], [0], [0], [1], [0, 0, 1, 1], [], []>} : vector<8x4xbf16>, vector<4x16xbf16>, vector<8x16xf32> -> vector<8x16xf32>
    %178 = arith.addf %173, %177 : vector<8x16xf32>
    %c0_152 = arith.constant 0 : index
    %179 = arith.index_cast %168 : i32 to index
    %c0_153 = arith.constant 0 : index
    %c2_154 = arith.constant 2 : index
    %180 = vector.load %arg3[%c0_152, %179, %c0_153, %c2_154] : memref<1x18x4x18xbf16, #tpu.memory_space<vmem>>, vector<1x1x4x16xbf16>
    %181 = vector.shape_cast %180 : vector<1x1x4x16xbf16> to vector<4x16xbf16>
    %cst_155 = arith.constant dense<0.000000e+00> : vector<8x16xf32>
    %182 = tpu.matmul %18, %181, %cst_155 {dimension_numbers = #tpu.dot_dimension_numbers<[1], [0], [0], [1], [0, 0, 1, 1], [], []>} : vector<8x4xbf16>, vector<4x16xbf16>, vector<8x16xf32> -> vector<8x16xf32>
    %183 = arith.addf %178, %182 : vector<8x16xf32>
    %c0_156 = arith.constant 0 : index
    %c0_157 = arith.constant 0 : index
    %c2_158 = arith.constant 2 : index
    %c0_159 = arith.constant 0 : index
    %184 = vector.load %arg4[%c0_156, %c0_157, %c2_158, %c0_159] : memref<1x8x8x16xf32, #tpu.memory_space<vmem>>, vector<1x8x1x16xf32>
    %185 = vector.shape_cast %184 : vector<1x8x1x16xf32> to vector<8x16xf32>
    %186 = vector.shape_cast %183 : vector<8x16xf32> to vector<1x8x1x16xf32>
    tpu.vector_store %arg4[%c0_156, %c0_157, %c2_158, %c0_159], %186 {strides = array<i32>} : memref<1x8x8x16xf32, #tpu.memory_space<vmem>>, vector<1x8x1x16xf32>,
    %c3_i32 = arith.constant 3 : i32
    %187 = arith.addi %0, %c3_i32 : i32
    %c0_i32_160 = arith.constant 0 : i32
    %188 = arith.addi %187, %c0_i32_160 : i32
    %c17_i32_161 = arith.constant 17 : i32
    %189 = arith.minsi %188, %c17_i32_161 : i32
    %c0_162 = arith.constant 0 : index
    %190 = arith.index_cast %189 : i32 to index
    %c0_163 = arith.constant 0 : index
    %c0_164 = arith.constant 0 : index
    %191 = vector.load %arg3[%c0_162, %190, %c0_163, %c0_164] : memref<1x18x4x18xbf16, #tpu.memory_space<vmem>>, vector<1x1x4x16xbf16>
    %192 = vector.shape_cast %191 : vector<1x1x4x16xbf16> to vector<4x16xbf16>
    %cst_165 = arith.constant dense<0.000000e+00> : vector<8x16xf32>
    %193 = tpu.matmul %2, %192, %cst_165 {dimension_numbers = #tpu.dot_dimension_numbers<[1], [0], [0], [1], [0, 0, 1, 1], [], []>} : vector<8x4xbf16>, vector<4x16xbf16>, vector<8x16xf32> -> vector<8x16xf32>
    %c0_166 = arith.constant 0 : index
    %194 = arith.index_cast %189 : i32 to index
    %c0_167 = arith.constant 0 : index
    %c1_168 = arith.constant 1 : index
    %195 = vector.load %arg3[%c0_166, %194, %c0_167, %c1_168] : memref<1x18x4x18xbf16, #tpu.memory_space<vmem>>, vector<1x1x4x16xbf16>
    %196 = vector.shape_cast %195 : vector<1x1x4x16xbf16> to vector<4x16xbf16>
    %cst_169 = arith.constant dense<0.000000e+00> : vector<8x16xf32>
    %197 = tpu.matmul %4, %196, %cst_169 {dimension_numbers = #tpu.dot_dimension_numbers<[1], [0], [0], [1], [0, 0, 1, 1], [], []>} : vector<8x4xbf16>, vector<4x16xbf16>, vector<8x16xf32> -> vector<8x16xf32>
    %198 = arith.addf %193, %197 : vector<8x16xf32>
    %c0_170 = arith.constant 0 : index
    %199 = arith.index_cast %189 : i32 to index
    %c0_171 = arith.constant 0 : index
    %c2_172 = arith.constant 2 : index
    %200 = vector.load %arg3[%c0_170, %199, %c0_171, %c2_172] : memref<1x18x4x18xbf16, #tpu.memory_space<vmem>>, vector<1x1x4x16xbf16>
    %201 = vector.shape_cast %200 : vector<1x1x4x16xbf16> to vector<4x16xbf16>
    %cst_173 = arith.constant dense<0.000000e+00> : vector<8x16xf32>
    %202 = tpu.matmul %6, %201, %cst_173 {dimension_numbers = #tpu.dot_dimension_numbers<[1], [0], [0], [1], [0, 0, 1, 1], [], []>} : vector<8x4xbf16>, vector<4x16xbf16>, vector<8x16xf32> -> vector<8x16xf32>
    %203 = arith.addf %198, %202 : vector<8x16xf32>
    %c3_i32_174 = arith.constant 3 : i32
    %204 = arith.addi %0, %c3_i32_174 : i32
    %c1_i32_175 = arith.constant 1 : i32
    %205 = arith.addi %204, %c1_i32_175 : i32
    %c17_i32_176 = arith.constant 17 : i32
    %206 = arith.minsi %205, %c17_i32_176 : i32
    %c0_177 = arith.constant 0 : index
    %207 = arith.index_cast %206 : i32 to index
    %c0_178 = arith.constant 0 : index
    %c0_179 = arith.constant 0 : index
    %208 = vector.load %arg3[%c0_177, %207, %c0_178, %c0_179] : memref<1x18x4x18xbf16, #tpu.memory_space<vmem>>, vector<1x1x4x16xbf16>
    %209 = vector.shape_cast %208 : vector<1x1x4x16xbf16> to vector<4x16xbf16>
    %cst_180 = arith.constant dense<0.000000e+00> : vector<8x16xf32>
    %210 = tpu.matmul %8, %209, %cst_180 {dimension_numbers = #tpu.dot_dimension_numbers<[1], [0], [0], [1], [0, 0, 1, 1], [], []>} : vector<8x4xbf16>, vector<4x16xbf16>, vector<8x16xf32> -> vector<8x16xf32>
    %211 = arith.addf %203, %210 : vector<8x16xf32>
    %c0_181 = arith.constant 0 : index
    %212 = arith.index_cast %206 : i32 to index
    %c0_182 = arith.constant 0 : index
    %c1_183 = arith.constant 1 : index
    %213 = vector.load %arg3[%c0_181, %212, %c0_182, %c1_183] : memref<1x18x4x18xbf16, #tpu.memory_space<vmem>>, vector<1x1x4x16xbf16>
    %214 = vector.shape_cast %213 : vector<1x1x4x16xbf16> to vector<4x16xbf16>
    %cst_184 = arith.constant dense<0.000000e+00> : vector<8x16xf32>
    %215 = tpu.matmul %10, %214, %cst_184 {dimension_numbers = #tpu.dot_dimension_numbers<[1], [0], [0], [1], [0, 0, 1, 1], [], []>} : vector<8x4xbf16>, vector<4x16xbf16>, vector<8x16xf32> -> vector<8x16xf32>
    %216 = arith.addf %211, %215 : vector<8x16xf32>
    %c0_185 = arith.constant 0 : index
    %217 = arith.index_cast %206 : i32 to index
    %c0_186 = arith.constant 0 : index
    %c2_187 = arith.constant 2 : index
    %218 = vector.load %arg3[%c0_185, %217, %c0_186, %c2_187] : memref<1x18x4x18xbf16, #tpu.memory_space<vmem>>, vector<1x1x4x16xbf16>
    %219 = vector.shape_cast %218 : vector<1x1x4x16xbf16> to vector<4x16xbf16>
    %cst_188 = arith.constant dense<0.000000e+00> : vector<8x16xf32>
    %220 = tpu.matmul %12, %219, %cst_188 {dimension_numbers = #tpu.dot_dimension_numbers<[1], [0], [0], [1], [0, 0, 1, 1], [], []>} : vector<8x4xbf16>, vector<4x16xbf16>, vector<8x16xf32> -> vector<8x16xf32>
    %221 = arith.addf %216, %220 : vector<8x16xf32>
    %c3_i32_189 = arith.constant 3 : i32
    %222 = arith.addi %0, %c3_i32_189 : i32
    %c2_i32_190 = arith.constant 2 : i32
    %223 = arith.addi %222, %c2_i32_190 : i32
    %c17_i32_191 = arith.constant 17 : i32
    %224 = arith.minsi %223, %c17_i32_191 : i32
    %c0_192 = arith.constant 0 : index
    %225 = arith.index_cast %224 : i32 to index
    %c0_193 = arith.constant 0 : index
    %c0_194 = arith.constant 0 : index
    %226 = vector.load %arg3[%c0_192, %225, %c0_193, %c0_194] : memref<1x18x4x18xbf16, #tpu.memory_space<vmem>>, vector<1x1x4x16xbf16>
    %227 = vector.shape_cast %226 : vector<1x1x4x16xbf16> to vector<4x16xbf16>
    %cst_195 = arith.constant dense<0.000000e+00> : vector<8x16xf32>
    %228 = tpu.matmul %14, %227, %cst_195 {dimension_numbers = #tpu.dot_dimension_numbers<[1], [0], [0], [1], [0, 0, 1, 1], [], []>} : vector<8x4xbf16>, vector<4x16xbf16>, vector<8x16xf32> -> vector<8x16xf32>
    %229 = arith.addf %221, %228 : vector<8x16xf32>
    %c0_196 = arith.constant 0 : index
    %230 = arith.index_cast %224 : i32 to index
    %c0_197 = arith.constant 0 : index
    %c1_198 = arith.constant 1 : index
    %231 = vector.load %arg3[%c0_196, %230, %c0_197, %c1_198] : memref<1x18x4x18xbf16, #tpu.memory_space<vmem>>, vector<1x1x4x16xbf16>
    %232 = vector.shape_cast %231 : vector<1x1x4x16xbf16> to vector<4x16xbf16>
    %cst_199 = arith.constant dense<0.000000e+00> : vector<8x16xf32>
    %233 = tpu.matmul %16, %232, %cst_199 {dimension_numbers = #tpu.dot_dimension_numbers<[1], [0], [0], [1], [0, 0, 1, 1], [], []>} : vector<8x4xbf16>, vector<4x16xbf16>, vector<8x16xf32> -> vector<8x16xf32>
    %234 = arith.addf %229, %233 : vector<8x16xf32>
    %c0_200 = arith.constant 0 : index
    %235 = arith.index_cast %224 : i32 to index
    %c0_201 = arith.constant 0 : index
    %c2_202 = arith.constant 2 : index
    %236 = vector.load %arg3[%c0_200, %235, %c0_201, %c2_202] : memref<1x18x4x18xbf16, #tpu.memory_space<vmem>>, vector<1x1x4x16xbf16>
    %237 = vector.shape_cast %236 : vector<1x1x4x16xbf16> to vector<4x16xbf16>
    %cst_203 = arith.constant dense<0.000000e+00> : vector<8x16xf32>
    %238 = tpu.matmul %18, %237, %cst_203 {dimension_numbers = #tpu.dot_dimension_numbers<[1], [0], [0], [1], [0, 0, 1, 1], [], []>} : vector<8x4xbf16>, vector<4x16xbf16>, vector<8x16xf32> -> vector<8x16xf32>
    %239 = arith.addf %234, %238 : vector<8x16xf32>
    %c0_204 = arith.constant 0 : index
    %c0_205 = arith.constant 0 : index
    %c3_206 = arith.constant 3 : index
    %c0_207 = arith.constant 0 : index
    %240 = vector.load %arg4[%c0_204, %c0_205, %c3_206, %c0_207] : memref<1x8x8x16xf32, #tpu.memory_space<vmem>>, vector<1x8x1x16xf32>
    %241 = vector.shape_cast %240 : vector<1x8x1x16xf32> to vector<8x16xf32>
    %242 = vector.shape_cast %239 : vector<8x16xf32> to vector<1x8x1x16xf32>
    tpu.vector_store %arg4[%c0_204, %c0_205, %c3_206, %c0_207], %242 {strides = array<i32>} : memref<1x8x8x16xf32, #tpu.memory_space<vmem>>, vector<1x8x1x16xf32>,
    %c4_i32 = arith.constant 4 : i32
    %243 = arith.addi %0, %c4_i32 : i32
    %c0_i32_208 = arith.constant 0 : i32
    %244 = arith.addi %243, %c0_i32_208 : i32
    %c17_i32_209 = arith.constant 17 : i32
    %245 = arith.minsi %244, %c17_i32_209 : i32
    %c0_210 = arith.constant 0 : index
    %246 = arith.index_cast %245 : i32 to index
    %c0_211 = arith.constant 0 : index
    %c0_212 = arith.constant 0 : index
    %247 = vector.load %arg3[%c0_210, %246, %c0_211, %c0_212] : memref<1x18x4x18xbf16, #tpu.memory_space<vmem>>, vector<1x1x4x16xbf16>
    %248 = vector.shape_cast %247 : vector<1x1x4x16xbf16> to vector<4x16xbf16>
    %cst_213 = arith.constant dense<0.000000e+00> : vector<8x16xf32>
    %249 = tpu.matmul %2, %248, %cst_213 {dimension_numbers = #tpu.dot_dimension_numbers<[1], [0], [0], [1], [0, 0, 1, 1], [], []>} : vector<8x4xbf16>, vector<4x16xbf16>, vector<8x16xf32> -> vector<8x16xf32>
    %c0_214 = arith.constant 0 : index
    %250 = arith.index_cast %245 : i32 to index
    %c0_215 = arith.constant 0 : index
    %c1_216 = arith.constant 1 : index
    %251 = vector.load %arg3[%c0_214, %250, %c0_215, %c1_216] : memref<1x18x4x18xbf16, #tpu.memory_space<vmem>>, vector<1x1x4x16xbf16>
    %252 = vector.shape_cast %251 : vector<1x1x4x16xbf16> to vector<4x16xbf16>
    %cst_217 = arith.constant dense<0.000000e+00> : vector<8x16xf32>
    %253 = tpu.matmul %4, %252, %cst_217 {dimension_numbers = #tpu.dot_dimension_numbers<[1], [0], [0], [1], [0, 0, 1, 1], [], []>} : vector<8x4xbf16>, vector<4x16xbf16>, vector<8x16xf32> -> vector<8x16xf32>
    %254 = arith.addf %249, %253 : vector<8x16xf32>
    %c0_218 = arith.constant 0 : index
    %255 = arith.index_cast %245 : i32 to index
    %c0_219 = arith.constant 0 : index
    %c2_220 = arith.constant 2 : index
    %256 = vector.load %arg3[%c0_218, %255, %c0_219, %c2_220] : memref<1x18x4x18xbf16, #tpu.memory_space<vmem>>, vector<1x1x4x16xbf16>
    %257 = vector.shape_cast %256 : vector<1x1x4x16xbf16> to vector<4x16xbf16>
    %cst_221 = arith.constant dense<0.000000e+00> : vector<8x16xf32>
    %258 = tpu.matmul %6, %257, %cst_221 {dimension_numbers = #tpu.dot_dimension_numbers<[1], [0], [0], [1], [0, 0, 1, 1], [], []>} : vector<8x4xbf16>, vector<4x16xbf16>, vector<8x16xf32> -> vector<8x16xf32>
    %259 = arith.addf %254, %258 : vector<8x16xf32>
    %c4_i32_222 = arith.constant 4 : i32
    %260 = arith.addi %0, %c4_i32_222 : i32
    %c1_i32_223 = arith.constant 1 : i32
    %261 = arith.addi %260, %c1_i32_223 : i32
    %c17_i32_224 = arith.constant 17 : i32
    %262 = arith.minsi %261, %c17_i32_224 : i32
    %c0_225 = arith.constant 0 : index
    %263 = arith.index_cast %262 : i32 to index
    %c0_226 = arith.constant 0 : index
    %c0_227 = arith.constant 0 : index
    %264 = vector.load %arg3[%c0_225, %263, %c0_226, %c0_227] : memref<1x18x4x18xbf16, #tpu.memory_space<vmem>>, vector<1x1x4x16xbf16>
    %265 = vector.shape_cast %264 : vector<1x1x4x16xbf16> to vector<4x16xbf16>
    %cst_228 = arith.constant dense<0.000000e+00> : vector<8x16xf32>
    %266 = tpu.matmul %8, %265, %cst_228 {dimension_numbers = #tpu.dot_dimension_numbers<[1], [0], [0], [1], [0, 0, 1, 1], [], []>} : vector<8x4xbf16>, vector<4x16xbf16>, vector<8x16xf32> -> vector<8x16xf32>
    %267 = arith.addf %259, %266 : vector<8x16xf32>
    %c0_229 = arith.constant 0 : index
    %268 = arith.index_cast %262 : i32 to index
    %c0_230 = arith.constant 0 : index
    %c1_231 = arith.constant 1 : index
    %269 = vector.load %arg3[%c0_229, %268, %c0_230, %c1_231] : memref<1x18x4x18xbf16, #tpu.memory_space<vmem>>, vector<1x1x4x16xbf16>
    %270 = vector.shape_cast %269 : vector<1x1x4x16xbf16> to vector<4x16xbf16>
    %cst_232 = arith.constant dense<0.000000e+00> : vector<8x16xf32>
    %271 = tpu.matmul %10, %270, %cst_232 {dimension_numbers = #tpu.dot_dimension_numbers<[1], [0], [0], [1], [0, 0, 1, 1], [], []>} : vector<8x4xbf16>, vector<4x16xbf16>, vector<8x16xf32> -> vector<8x16xf32>
    %272 = arith.addf %267, %271 : vector<8x16xf32>
    %c0_233 = arith.constant 0 : index
    %273 = arith.index_cast %262 : i32 to index
    %c0_234 = arith.constant 0 : index
    %c2_235 = arith.constant 2 : index
    %274 = vector.load %arg3[%c0_233, %273, %c0_234, %c2_235] : memref<1x18x4x18xbf16, #tpu.memory_space<vmem>>, vector<1x1x4x16xbf16>
    %275 = vector.shape_cast %274 : vector<1x1x4x16xbf16> to vector<4x16xbf16>
    %cst_236 = arith.constant dense<0.000000e+00> : vector<8x16xf32>
    %276 = tpu.matmul %12, %275, %cst_236 {dimension_numbers = #tpu.dot_dimension_numbers<[1], [0], [0], [1], [0, 0, 1, 1], [], []>} : vector<8x4xbf16>, vector<4x16xbf16>, vector<8x16xf32> -> vector<8x16xf32>
    %277 = arith.addf %272, %276 : vector<8x16xf32>
    %c4_i32_237 = arith.constant 4 : i32
    %278 = arith.addi %0, %c4_i32_237 : i32
    %c2_i32_238 = arith.constant 2 : i32
    %279 = arith.addi %278, %c2_i32_238 : i32
    %c17_i32_239 = arith.constant 17 : i32
    %280 = arith.minsi %279, %c17_i32_239 : i32
    %c0_240 = arith.constant 0 : index
    %281 = arith.index_cast %280 : i32 to index
    %c0_241 = arith.constant 0 : index
    %c0_242 = arith.constant 0 : index
    %282 = vector.load %arg3[%c0_240, %281, %c0_241, %c0_242] : memref<1x18x4x18xbf16, #tpu.memory_space<vmem>>, vector<1x1x4x16xbf16>
    %283 = vector.shape_cast %282 : vector<1x1x4x16xbf16> to vector<4x16xbf16>
    %cst_243 = arith.constant dense<0.000000e+00> : vector<8x16xf32>
    %284 = tpu.matmul %14, %283, %cst_243 {dimension_numbers = #tpu.dot_dimension_numbers<[1], [0], [0], [1], [0, 0, 1, 1], [], []>} : vector<8x4xbf16>, vector<4x16xbf16>, vector<8x16xf32> -> vector<8x16xf32>
    %285 = arith.addf %277, %284 : vector<8x16xf32>
    %c0_244 = arith.constant 0 : index
    %286 = arith.index_cast %280 : i32 to index
    %c0_245 = arith.constant 0 : index
    %c1_246 = arith.constant 1 : index
    %287 = vector.load %arg3[%c0_244, %286, %c0_245, %c1_246] : memref<1x18x4x18xbf16, #tpu.memory_space<vmem>>, vector<1x1x4x16xbf16>
    %288 = vector.shape_cast %287 : vector<1x1x4x16xbf16> to vector<4x16xbf16>
    %cst_247 = arith.constant dense<0.000000e+00> : vector<8x16xf32>
    %289 = tpu.matmul %16, %288, %cst_247 {dimension_numbers = #tpu.dot_dimension_numbers<[1], [0], [0], [1], [0, 0, 1, 1], [], []>} : vector<8x4xbf16>, vector<4x16xbf16>, vector<8x16xf32> -> vector<8x16xf32>
    %290 = arith.addf %285, %289 : vector<8x16xf32>
    %c0_248 = arith.constant 0 : index
    %291 = arith.index_cast %280 : i32 to index
    %c0_249 = arith.constant 0 : index
    %c2_250 = arith.constant 2 : index
    %292 = vector.load %arg3[%c0_248, %291, %c0_249, %c2_250] : memref<1x18x4x18xbf16, #tpu.memory_space<vmem>>, vector<1x1x4x16xbf16>
    %293 = vector.shape_cast %292 : vector<1x1x4x16xbf16> to vector<4x16xbf16>
    %cst_251 = arith.constant dense<0.000000e+00> : vector<8x16xf32>
    %294 = tpu.matmul %18, %293, %cst_251 {dimension_numbers = #tpu.dot_dimension_numbers<[1], [0], [0], [1], [0, 0, 1, 1], [], []>} : vector<8x4xbf16>, vector<4x16xbf16>, vector<8x16xf32> -> vector<8x16xf32>
    %295 = arith.addf %290, %294 : vector<8x16xf32>
    %c0_252 = arith.constant 0 : index
    %c0_253 = arith.constant 0 : index
    %c4_254 = arith.constant 4 : index
    %c0_255 = arith.constant 0 : index
    %296 = vector.load %arg4[%c0_252, %c0_253, %c4_254, %c0_255] : memref<1x8x8x16xf32, #tpu.memory_space<vmem>>, vector<1x8x1x16xf32>
    %297 = vector.shape_cast %296 : vector<1x8x1x16xf32> to vector<8x16xf32>
    %298 = vector.shape_cast %295 : vector<8x16xf32> to vector<1x8x1x16xf32>
    tpu.vector_store %arg4[%c0_252, %c0_253, %c4_254, %c0_255], %298 {strides = array<i32>} : memref<1x8x8x16xf32, #tpu.memory_space<vmem>>, vector<1x8x1x16xf32>,
    %c5_i32 = arith.constant 5 : i32
    %299 = arith.addi %0, %c5_i32 : i32
    %c0_i32_256 = arith.constant 0 : i32
    %300 = arith.addi %299, %c0_i32_256 : i32
    %c17_i32_257 = arith.constant 17 : i32
    %301 = arith.minsi %300, %c17_i32_257 : i32
    %c0_258 = arith.constant 0 : index
    %302 = arith.index_cast %301 : i32 to index
    %c0_259 = arith.constant 0 : index
    %c0_260 = arith.constant 0 : index
    %303 = vector.load %arg3[%c0_258, %302, %c0_259, %c0_260] : memref<1x18x4x18xbf16, #tpu.memory_space<vmem>>, vector<1x1x4x16xbf16>
    %304 = vector.shape_cast %303 : vector<1x1x4x16xbf16> to vector<4x16xbf16>
    %cst_261 = arith.constant dense<0.000000e+00> : vector<8x16xf32>
    %305 = tpu.matmul %2, %304, %cst_261 {dimension_numbers = #tpu.dot_dimension_numbers<[1], [0], [0], [1], [0, 0, 1, 1], [], []>} : vector<8x4xbf16>, vector<4x16xbf16>, vector<8x16xf32> -> vector<8x16xf32>
    %c0_262 = arith.constant 0 : index
    %306 = arith.index_cast %301 : i32 to index
    %c0_263 = arith.constant 0 : index
    %c1_264 = arith.constant 1 : index
    %307 = vector.load %arg3[%c0_262, %306, %c0_263, %c1_264] : memref<1x18x4x18xbf16, #tpu.memory_space<vmem>>, vector<1x1x4x16xbf16>
    %308 = vector.shape_cast %307 : vector<1x1x4x16xbf16> to vector<4x16xbf16>
    %cst_265 = arith.constant dense<0.000000e+00> : vector<8x16xf32>
    %309 = tpu.matmul %4, %308, %cst_265 {dimension_numbers = #tpu.dot_dimension_numbers<[1], [0], [0], [1], [0, 0, 1, 1], [], []>} : vector<8x4xbf16>, vector<4x16xbf16>, vector<8x16xf32> -> vector<8x16xf32>
    %310 = arith.addf %305, %309 : vector<8x16xf32>
    %c0_266 = arith.constant 0 : index
    %311 = arith.index_cast %301 : i32 to index
    %c0_267 = arith.constant 0 : index
    %c2_268 = arith.constant 2 : index
    %312 = vector.load %arg3[%c0_266, %311, %c0_267, %c2_268] : memref<1x18x4x18xbf16, #tpu.memory_space<vmem>>, vector<1x1x4x16xbf16>
    %313 = vector.shape_cast %312 : vector<1x1x4x16xbf16> to vector<4x16xbf16>
    %cst_269 = arith.constant dense<0.000000e+00> : vector<8x16xf32>
    %314 = tpu.matmul %6, %313, %cst_269 {dimension_numbers = #tpu.dot_dimension_numbers<[1], [0], [0], [1], [0, 0, 1, 1], [], []>} : vector<8x4xbf16>, vector<4x16xbf16>, vector<8x16xf32> -> vector<8x16xf32>
    %315 = arith.addf %310, %314 : vector<8x16xf32>
    %c5_i32_270 = arith.constant 5 : i32
    %316 = arith.addi %0, %c5_i32_270 : i32
    %c1_i32_271 = arith.constant 1 : i32
    %317 = arith.addi %316, %c1_i32_271 : i32
    %c17_i32_272 = arith.constant 17 : i32
    %318 = arith.minsi %317, %c17_i32_272 : i32
    %c0_273 = arith.constant 0 : index
    %319 = arith.index_cast %318 : i32 to index
    %c0_274 = arith.constant 0 : index
    %c0_275 = arith.constant 0 : index
    %320 = vector.load %arg3[%c0_273, %319, %c0_274, %c0_275] : memref<1x18x4x18xbf16, #tpu.memory_space<vmem>>, vector<1x1x4x16xbf16>
    %321 = vector.shape_cast %320 : vector<1x1x4x16xbf16> to vector<4x16xbf16>
    %cst_276 = arith.constant dense<0.000000e+00> : vector<8x16xf32>
    %322 = tpu.matmul %8, %321, %cst_276 {dimension_numbers = #tpu.dot_dimension_numbers<[1], [0], [0], [1], [0, 0, 1, 1], [], []>} : vector<8x4xbf16>, vector<4x16xbf16>, vector<8x16xf32> -> vector<8x16xf32>
    %323 = arith.addf %315, %322 : vector<8x16xf32>
    %c0_277 = arith.constant 0 : index
    %324 = arith.index_cast %318 : i32 to index
    %c0_278 = arith.constant 0 : index
    %c1_279 = arith.constant 1 : index
    %325 = vector.load %arg3[%c0_277, %324, %c0_278, %c1_279] : memref<1x18x4x18xbf16, #tpu.memory_space<vmem>>, vector<1x1x4x16xbf16>
    %326 = vector.shape_cast %325 : vector<1x1x4x16xbf16> to vector<4x16xbf16>
    %cst_280 = arith.constant dense<0.000000e+00> : vector<8x16xf32>
    %327 = tpu.matmul %10, %326, %cst_280 {dimension_numbers = #tpu.dot_dimension_numbers<[1], [0], [0], [1], [0, 0, 1, 1], [], []>} : vector<8x4xbf16>, vector<4x16xbf16>, vector<8x16xf32> -> vector<8x16xf32>
    %328 = arith.addf %323, %327 : vector<8x16xf32>
    %c0_281 = arith.constant 0 : index
    %329 = arith.index_cast %318 : i32 to index
    %c0_282 = arith.constant 0 : index
    %c2_283 = arith.constant 2 : index
    %330 = vector.load %arg3[%c0_281, %329, %c0_282, %c2_283] : memref<1x18x4x18xbf16, #tpu.memory_space<vmem>>, vector<1x1x4x16xbf16>
    %331 = vector.shape_cast %330 : vector<1x1x4x16xbf16> to vector<4x16xbf16>
    %cst_284 = arith.constant dense<0.000000e+00> : vector<8x16xf32>
    %332 = tpu.matmul %12, %331, %cst_284 {dimension_numbers = #tpu.dot_dimension_numbers<[1], [0], [0], [1], [0, 0, 1, 1], [], []>} : vector<8x4xbf16>, vector<4x16xbf16>, vector<8x16xf32> -> vector<8x16xf32>
    %333 = arith.addf %328, %332 : vector<8x16xf32>
    %c5_i32_285 = arith.constant 5 : i32
    %334 = arith.addi %0, %c5_i32_285 : i32
    %c2_i32_286 = arith.constant 2 : i32
    %335 = arith.addi %334, %c2_i32_286 : i32
    %c17_i32_287 = arith.constant 17 : i32
    %336 = arith.minsi %335, %c17_i32_287 : i32
    %c0_288 = arith.constant 0 : index
    %337 = arith.index_cast %336 : i32 to index
    %c0_289 = arith.constant 0 : index
    %c0_290 = arith.constant 0 : index
    %338 = vector.load %arg3[%c0_288, %337, %c0_289, %c0_290] : memref<1x18x4x18xbf16, #tpu.memory_space<vmem>>, vector<1x1x4x16xbf16>
    %339 = vector.shape_cast %338 : vector<1x1x4x16xbf16> to vector<4x16xbf16>
    %cst_291 = arith.constant dense<0.000000e+00> : vector<8x16xf32>
    %340 = tpu.matmul %14, %339, %cst_291 {dimension_numbers = #tpu.dot_dimension_numbers<[1], [0], [0], [1], [0, 0, 1, 1], [], []>} : vector<8x4xbf16>, vector<4x16xbf16>, vector<8x16xf32> -> vector<8x16xf32>
    %341 = arith.addf %333, %340 : vector<8x16xf32>
    %c0_292 = arith.constant 0 : index
    %342 = arith.index_cast %336 : i32 to index
    %c0_293 = arith.constant 0 : index
    %c1_294 = arith.constant 1 : index
    %343 = vector.load %arg3[%c0_292, %342, %c0_293, %c1_294] : memref<1x18x4x18xbf16, #tpu.memory_space<vmem>>, vector<1x1x4x16xbf16>
    %344 = vector.shape_cast %343 : vector<1x1x4x16xbf16> to vector<4x16xbf16>
    %cst_295 = arith.constant dense<0.000000e+00> : vector<8x16xf32>
    %345 = tpu.matmul %16, %344, %cst_295 {dimension_numbers = #tpu.dot_dimension_numbers<[1], [0], [0], [1], [0, 0, 1, 1], [], []>} : vector<8x4xbf16>, vector<4x16xbf16>, vector<8x16xf32> -> vector<8x16xf32>
    %346 = arith.addf %341, %345 : vector<8x16xf32>
    %c0_296 = arith.constant 0 : index
    %347 = arith.index_cast %336 : i32 to index
    %c0_297 = arith.constant 0 : index
    %c2_298 = arith.constant 2 : index
    %348 = vector.load %arg3[%c0_296, %347, %c0_297, %c2_298] : memref<1x18x4x18xbf16, #tpu.memory_space<vmem>>, vector<1x1x4x16xbf16>
    %349 = vector.shape_cast %348 : vector<1x1x4x16xbf16> to vector<4x16xbf16>
    %cst_299 = arith.constant dense<0.000000e+00> : vector<8x16xf32>
    %350 = tpu.matmul %18, %349, %cst_299 {dimension_numbers = #tpu.dot_dimension_numbers<[1], [0], [0], [1], [0, 0, 1, 1], [], []>} : vector<8x4xbf16>, vector<4x16xbf16>, vector<8x16xf32> -> vector<8x16xf32>
    %351 = arith.addf %346, %350 : vector<8x16xf32>
    %c0_300 = arith.constant 0 : index
    %c0_301 = arith.constant 0 : index
    %c5_302 = arith.constant 5 : index
    %c0_303 = arith.constant 0 : index
    %352 = vector.load %arg4[%c0_300, %c0_301, %c5_302, %c0_303] : memref<1x8x8x16xf32, #tpu.memory_space<vmem>>, vector<1x8x1x16xf32>
    %353 = vector.shape_cast %352 : vector<1x8x1x16xf32> to vector<8x16xf32>
    %354 = vector.shape_cast %351 : vector<8x16xf32> to vector<1x8x1x16xf32>
    tpu.vector_store %arg4[%c0_300, %c0_301, %c5_302, %c0_303], %354 {strides = array<i32>} : memref<1x8x8x16xf32, #tpu.memory_space<vmem>>, vector<1x8x1x16xf32>,
    %c6_i32 = arith.constant 6 : i32
    %355 = arith.addi %0, %c6_i32 : i32
    %c0_i32_304 = arith.constant 0 : i32
    %356 = arith.addi %355, %c0_i32_304 : i32
    %c17_i32_305 = arith.constant 17 : i32
    %357 = arith.minsi %356, %c17_i32_305 : i32
    %c0_306 = arith.constant 0 : index
    %358 = arith.index_cast %357 : i32 to index
    %c0_307 = arith.constant 0 : index
    %c0_308 = arith.constant 0 : index
    %359 = vector.load %arg3[%c0_306, %358, %c0_307, %c0_308] : memref<1x18x4x18xbf16, #tpu.memory_space<vmem>>, vector<1x1x4x16xbf16>
    %360 = vector.shape_cast %359 : vector<1x1x4x16xbf16> to vector<4x16xbf16>
    %cst_309 = arith.constant dense<0.000000e+00> : vector<8x16xf32>
    %361 = tpu.matmul %2, %360, %cst_309 {dimension_numbers = #tpu.dot_dimension_numbers<[1], [0], [0], [1], [0, 0, 1, 1], [], []>} : vector<8x4xbf16>, vector<4x16xbf16>, vector<8x16xf32> -> vector<8x16xf32>
    %c0_310 = arith.constant 0 : index
    %362 = arith.index_cast %357 : i32 to index
    %c0_311 = arith.constant 0 : index
    %c1_312 = arith.constant 1 : index
    %363 = vector.load %arg3[%c0_310, %362, %c0_311, %c1_312] : memref<1x18x4x18xbf16, #tpu.memory_space<vmem>>, vector<1x1x4x16xbf16>
    %364 = vector.shape_cast %363 : vector<1x1x4x16xbf16> to vector<4x16xbf16>
    %cst_313 = arith.constant dense<0.000000e+00> : vector<8x16xf32>
    %365 = tpu.matmul %4, %364, %cst_313 {dimension_numbers = #tpu.dot_dimension_numbers<[1], [0], [0], [1], [0, 0, 1, 1], [], []>} : vector<8x4xbf16>, vector<4x16xbf16>, vector<8x16xf32> -> vector<8x16xf32>
    %366 = arith.addf %361, %365 : vector<8x16xf32>
    %c0_314 = arith.constant 0 : index
    %367 = arith.index_cast %357 : i32 to index
    %c0_315 = arith.constant 0 : index
    %c2_316 = arith.constant 2 : index
    %368 = vector.load %arg3[%c0_314, %367, %c0_315, %c2_316] : memref<1x18x4x18xbf16, #tpu.memory_space<vmem>>, vector<1x1x4x16xbf16>
    %369 = vector.shape_cast %368 : vector<1x1x4x16xbf16> to vector<4x16xbf16>
    %cst_317 = arith.constant dense<0.000000e+00> : vector<8x16xf32>
    %370 = tpu.matmul %6, %369, %cst_317 {dimension_numbers = #tpu.dot_dimension_numbers<[1], [0], [0], [1], [0, 0, 1, 1], [], []>} : vector<8x4xbf16>, vector<4x16xbf16>, vector<8x16xf32> -> vector<8x16xf32>
    %371 = arith.addf %366, %370 : vector<8x16xf32>
    %c6_i32_318 = arith.constant 6 : i32
    %372 = arith.addi %0, %c6_i32_318 : i32
    %c1_i32_319 = arith.constant 1 : i32
    %373 = arith.addi %372, %c1_i32_319 : i32
    %c17_i32_320 = arith.constant 17 : i32
    %374 = arith.minsi %373, %c17_i32_320 : i32
    %c0_321 = arith.constant 0 : index
    %375 = arith.index_cast %374 : i32 to index
    %c0_322 = arith.constant 0 : index
    %c0_323 = arith.constant 0 : index
    %376 = vector.load %arg3[%c0_321, %375, %c0_322, %c0_323] : memref<1x18x4x18xbf16, #tpu.memory_space<vmem>>, vector<1x1x4x16xbf16>
    %377 = vector.shape_cast %376 : vector<1x1x4x16xbf16> to vector<4x16xbf16>
    %cst_324 = arith.constant dense<0.000000e+00> : vector<8x16xf32>
    %378 = tpu.matmul %8, %377, %cst_324 {dimension_numbers = #tpu.dot_dimension_numbers<[1], [0], [0], [1], [0, 0, 1, 1], [], []>} : vector<8x4xbf16>, vector<4x16xbf16>, vector<8x16xf32> -> vector<8x16xf32>
    %379 = arith.addf %371, %378 : vector<8x16xf32>
    %c0_325 = arith.constant 0 : index
    %380 = arith.index_cast %374 : i32 to index
    %c0_326 = arith.constant 0 : index
    %c1_327 = arith.constant 1 : index
    %381 = vector.load %arg3[%c0_325, %380, %c0_326, %c1_327] : memref<1x18x4x18xbf16, #tpu.memory_space<vmem>>, vector<1x1x4x16xbf16>
    %382 = vector.shape_cast %381 : vector<1x1x4x16xbf16> to vector<4x16xbf16>
    %cst_328 = arith.constant dense<0.000000e+00> : vector<8x16xf32>
    %383 = tpu.matmul %10, %382, %cst_328 {dimension_numbers = #tpu.dot_dimension_numbers<[1], [0], [0], [1], [0, 0, 1, 1], [], []>} : vector<8x4xbf16>, vector<4x16xbf16>, vector<8x16xf32> -> vector<8x16xf32>
    %384 = arith.addf %379, %383 : vector<8x16xf32>
    %c0_329 = arith.constant 0 : index
    %385 = arith.index_cast %374 : i32 to index
    %c0_330 = arith.constant 0 : index
    %c2_331 = arith.constant 2 : index
    %386 = vector.load %arg3[%c0_329, %385, %c0_330, %c2_331] : memref<1x18x4x18xbf16, #tpu.memory_space<vmem>>, vector<1x1x4x16xbf16>
    %387 = vector.shape_cast %386 : vector<1x1x4x16xbf16> to vector<4x16xbf16>
    %cst_332 = arith.constant dense<0.000000e+00> : vector<8x16xf32>
    %388 = tpu.matmul %12, %387, %cst_332 {dimension_numbers = #tpu.dot_dimension_numbers<[1], [0], [0], [1], [0, 0, 1, 1], [], []>} : vector<8x4xbf16>, vector<4x16xbf16>, vector<8x16xf32> -> vector<8x16xf32>
    %389 = arith.addf %384, %388 : vector<8x16xf32>
    %c6_i32_333 = arith.constant 6 : i32
    %390 = arith.addi %0, %c6_i32_333 : i32
    %c2_i32_334 = arith.constant 2 : i32
    %391 = arith.addi %390, %c2_i32_334 : i32
    %c17_i32_335 = arith.constant 17 : i32
    %392 = arith.minsi %391, %c17_i32_335 : i32
    %c0_336 = arith.constant 0 : index
    %393 = arith.index_cast %392 : i32 to index
    %c0_337 = arith.constant 0 : index
    %c0_338 = arith.constant 0 : index
    %394 = vector.load %arg3[%c0_336, %393, %c0_337, %c0_338] : memref<1x18x4x18xbf16, #tpu.memory_space<vmem>>, vector<1x1x4x16xbf16>
    %395 = vector.shape_cast %394 : vector<1x1x4x16xbf16> to vector<4x16xbf16>
    %cst_339 = arith.constant dense<0.000000e+00> : vector<8x16xf32>
    %396 = tpu.matmul %14, %395, %cst_339 {dimension_numbers = #tpu.dot_dimension_numbers<[1], [0], [0], [1], [0, 0, 1, 1], [], []>} : vector<8x4xbf16>, vector<4x16xbf16>, vector<8x16xf32> -> vector<8x16xf32>
    %397 = arith.addf %389, %396 : vector<8x16xf32>
    %c0_340 = arith.constant 0 : index
    %398 = arith.index_cast %392 : i32 to index
    %c0_341 = arith.constant 0 : index
    %c1_342 = arith.constant 1 : index
    %399 = vector.load %arg3[%c0_340, %398, %c0_341, %c1_342] : memref<1x18x4x18xbf16, #tpu.memory_space<vmem>>, vector<1x1x4x16xbf16>
    %400 = vector.shape_cast %399 : vector<1x1x4x16xbf16> to vector<4x16xbf16>
    %cst_343 = arith.constant dense<0.000000e+00> : vector<8x16xf32>
    %401 = tpu.matmul %16, %400, %cst_343 {dimension_numbers = #tpu.dot_dimension_numbers<[1], [0], [0], [1], [0, 0, 1, 1], [], []>} : vector<8x4xbf16>, vector<4x16xbf16>, vector<8x16xf32> -> vector<8x16xf32>
    %402 = arith.addf %397, %401 : vector<8x16xf32>
    %c0_344 = arith.constant 0 : index
    %403 = arith.index_cast %392 : i32 to index
    %c0_345 = arith.constant 0 : index
    %c2_346 = arith.constant 2 : index
    %404 = vector.load %arg3[%c0_344, %403, %c0_345, %c2_346] : memref<1x18x4x18xbf16, #tpu.memory_space<vmem>>, vector<1x1x4x16xbf16>
    %405 = vector.shape_cast %404 : vector<1x1x4x16xbf16> to vector<4x16xbf16>
    %cst_347 = arith.constant dense<0.000000e+00> : vector<8x16xf32>
    %406 = tpu.matmul %18, %405, %cst_347 {dimension_numbers = #tpu.dot_dimension_numbers<[1], [0], [0], [1], [0, 0, 1, 1], [], []>} : vector<8x4xbf16>, vector<4x16xbf16>, vector<8x16xf32> -> vector<8x16xf32>
    %407 = arith.addf %402, %406 : vector<8x16xf32>
    %c0_348 = arith.constant 0 : index
    %c0_349 = arith.constant 0 : index
    %c6_350 = arith.constant 6 : index
    %c0_351 = arith.constant 0 : index
    %408 = vector.load %arg4[%c0_348, %c0_349, %c6_350, %c0_351] : memref<1x8x8x16xf32, #tpu.memory_space<vmem>>, vector<1x8x1x16xf32>
    %409 = vector.shape_cast %408 : vector<1x8x1x16xf32> to vector<8x16xf32>
    %410 = vector.shape_cast %407 : vector<8x16xf32> to vector<1x8x1x16xf32>
    tpu.vector_store %arg4[%c0_348, %c0_349, %c6_350, %c0_351], %410 {strides = array<i32>} : memref<1x8x8x16xf32, #tpu.memory_space<vmem>>, vector<1x8x1x16xf32>,
    %c7_i32 = arith.constant 7 : i32
    %411 = arith.addi %0, %c7_i32 : i32
    %c0_i32_352 = arith.constant 0 : i32
    %412 = arith.addi %411, %c0_i32_352 : i32
    %c17_i32_353 = arith.constant 17 : i32
    %413 = arith.minsi %412, %c17_i32_353 : i32
    %c0_354 = arith.constant 0 : index
    %414 = arith.index_cast %413 : i32 to index
    %c0_355 = arith.constant 0 : index
    %c0_356 = arith.constant 0 : index
    %415 = vector.load %arg3[%c0_354, %414, %c0_355, %c0_356] : memref<1x18x4x18xbf16, #tpu.memory_space<vmem>>, vector<1x1x4x16xbf16>
    %416 = vector.shape_cast %415 : vector<1x1x4x16xbf16> to vector<4x16xbf16>
    %cst_357 = arith.constant dense<0.000000e+00> : vector<8x16xf32>
    %417 = tpu.matmul %2, %416, %cst_357 {dimension_numbers = #tpu.dot_dimension_numbers<[1], [0], [0], [1], [0, 0, 1, 1], [], []>} : vector<8x4xbf16>, vector<4x16xbf16>, vector<8x16xf32> -> vector<8x16xf32>
    %c0_358 = arith.constant 0 : index
    %418 = arith.index_cast %413 : i32 to index
    %c0_359 = arith.constant 0 : index
    %c1_360 = arith.constant 1 : index
    %419 = vector.load %arg3[%c0_358, %418, %c0_359, %c1_360] : memref<1x18x4x18xbf16, #tpu.memory_space<vmem>>, vector<1x1x4x16xbf16>
    %420 = vector.shape_cast %419 : vector<1x1x4x16xbf16> to vector<4x16xbf16>
    %cst_361 = arith.constant dense<0.000000e+00> : vector<8x16xf32>
    %421 = tpu.matmul %4, %420, %cst_361 {dimension_numbers = #tpu.dot_dimension_numbers<[1], [0], [0], [1], [0, 0, 1, 1], [], []>} : vector<8x4xbf16>, vector<4x16xbf16>, vector<8x16xf32> -> vector<8x16xf32>
    %422 = arith.addf %417, %421 : vector<8x16xf32>
    %c0_362 = arith.constant 0 : index
    %423 = arith.index_cast %413 : i32 to index
    %c0_363 = arith.constant 0 : index
    %c2_364 = arith.constant 2 : index
    %424 = vector.load %arg3[%c0_362, %423, %c0_363, %c2_364] : memref<1x18x4x18xbf16, #tpu.memory_space<vmem>>, vector<1x1x4x16xbf16>
    %425 = vector.shape_cast %424 : vector<1x1x4x16xbf16> to vector<4x16xbf16>
    %cst_365 = arith.constant dense<0.000000e+00> : vector<8x16xf32>
    %426 = tpu.matmul %6, %425, %cst_365 {dimension_numbers = #tpu.dot_dimension_numbers<[1], [0], [0], [1], [0, 0, 1, 1], [], []>} : vector<8x4xbf16>, vector<4x16xbf16>, vector<8x16xf32> -> vector<8x16xf32>
    %427 = arith.addf %422, %426 : vector<8x16xf32>
    %c7_i32_366 = arith.constant 7 : i32
    %428 = arith.addi %0, %c7_i32_366 : i32
    %c1_i32_367 = arith.constant 1 : i32
    %429 = arith.addi %428, %c1_i32_367 : i32
    %c17_i32_368 = arith.constant 17 : i32
    %430 = arith.minsi %429, %c17_i32_368 : i32
    %c0_369 = arith.constant 0 : index
    %431 = arith.index_cast %430 : i32 to index
    %c0_370 = arith.constant 0 : index
    %c0_371 = arith.constant 0 : index
    %432 = vector.load %arg3[%c0_369, %431, %c0_370, %c0_371] : memref<1x18x4x18xbf16, #tpu.memory_space<vmem>>, vector<1x1x4x16xbf16>
    %433 = vector.shape_cast %432 : vector<1x1x4x16xbf16> to vector<4x16xbf16>
    %cst_372 = arith.constant dense<0.000000e+00> : vector<8x16xf32>
    %434 = tpu.matmul %8, %433, %cst_372 {dimension_numbers = #tpu.dot_dimension_numbers<[1], [0], [0], [1], [0, 0, 1, 1], [], []>} : vector<8x4xbf16>, vector<4x16xbf16>, vector<8x16xf32> -> vector<8x16xf32>
    %435 = arith.addf %427, %434 : vector<8x16xf32>
    %c0_373 = arith.constant 0 : index
    %436 = arith.index_cast %430 : i32 to index
    %c0_374 = arith.constant 0 : index
    %c1_375 = arith.constant 1 : index
    %437 = vector.load %arg3[%c0_373, %436, %c0_374, %c1_375] : memref<1x18x4x18xbf16, #tpu.memory_space<vmem>>, vector<1x1x4x16xbf16>
    %438 = vector.shape_cast %437 : vector<1x1x4x16xbf16> to vector<4x16xbf16>
    %cst_376 = arith.constant dense<0.000000e+00> : vector<8x16xf32>
    %439 = tpu.matmul %10, %438, %cst_376 {dimension_numbers = #tpu.dot_dimension_numbers<[1], [0], [0], [1], [0, 0, 1, 1], [], []>} : vector<8x4xbf16>, vector<4x16xbf16>, vector<8x16xf32> -> vector<8x16xf32>
    %440 = arith.addf %435, %439 : vector<8x16xf32>
    %c0_377 = arith.constant 0 : index
    %441 = arith.index_cast %430 : i32 to index
    %c0_378 = arith.constant 0 : index
    %c2_379 = arith.constant 2 : index
    %442 = vector.load %arg3[%c0_377, %441, %c0_378, %c2_379] : memref<1x18x4x18xbf16, #tpu.memory_space<vmem>>, vector<1x1x4x16xbf16>
    %443 = vector.shape_cast %442 : vector<1x1x4x16xbf16> to vector<4x16xbf16>
    %cst_380 = arith.constant dense<0.000000e+00> : vector<8x16xf32>
    %444 = tpu.matmul %12, %443, %cst_380 {dimension_numbers = #tpu.dot_dimension_numbers<[1], [0], [0], [1], [0, 0, 1, 1], [], []>} : vector<8x4xbf16>, vector<4x16xbf16>, vector<8x16xf32> -> vector<8x16xf32>
    %445 = arith.addf %440, %444 : vector<8x16xf32>
    %c7_i32_381 = arith.constant 7 : i32
    %446 = arith.addi %0, %c7_i32_381 : i32
    %c2_i32_382 = arith.constant 2 : i32
    %447 = arith.addi %446, %c2_i32_382 : i32
    %c17_i32_383 = arith.constant 17 : i32
    %448 = arith.minsi %447, %c17_i32_383 : i32
    %c0_384 = arith.constant 0 : index
    %449 = arith.index_cast %448 : i32 to index
    %c0_385 = arith.constant 0 : index
    %c0_386 = arith.constant 0 : index
    %450 = vector.load %arg3[%c0_384, %449, %c0_385, %c0_386] : memref<1x18x4x18xbf16, #tpu.memory_space<vmem>>, vector<1x1x4x16xbf16>
    %451 = vector.shape_cast %450 : vector<1x1x4x16xbf16> to vector<4x16xbf16>
    %cst_387 = arith.constant dense<0.000000e+00> : vector<8x16xf32>
    %452 = tpu.matmul %14, %451, %cst_387 {dimension_numbers = #tpu.dot_dimension_numbers<[1], [0], [0], [1], [0, 0, 1, 1], [], []>} : vector<8x4xbf16>, vector<4x16xbf16>, vector<8x16xf32> -> vector<8x16xf32>
    %453 = arith.addf %445, %452 : vector<8x16xf32>
    %c0_388 = arith.constant 0 : index
    %454 = arith.index_cast %448 : i32 to index
    %c0_389 = arith.constant 0 : index
    %c1_390 = arith.constant 1 : index
    %455 = vector.load %arg3[%c0_388, %454, %c0_389, %c1_390] : memref<1x18x4x18xbf16, #tpu.memory_space<vmem>>, vector<1x1x4x16xbf16>
    %456 = vector.shape_cast %455 : vector<1x1x4x16xbf16> to vector<4x16xbf16>
    %cst_391 = arith.constant dense<0.000000e+00> : vector<8x16xf32>
    %457 = tpu.matmul %16, %456, %cst_391 {dimension_numbers = #tpu.dot_dimension_numbers<[1], [0], [0], [1], [0, 0, 1, 1], [], []>} : vector<8x4xbf16>, vector<4x16xbf16>, vector<8x16xf32> -> vector<8x16xf32>
    %458 = arith.addf %453, %457 : vector<8x16xf32>
    %c0_392 = arith.constant 0 : index
    %459 = arith.index_cast %448 : i32 to index
    %c0_393 = arith.constant 0 : index
    %c2_394 = arith.constant 2 : index
    %460 = vector.load %arg3[%c0_392, %459, %c0_393, %c2_394] : memref<1x18x4x18xbf16, #tpu.memory_space<vmem>>, vector<1x1x4x16xbf16>
    %461 = vector.shape_cast %460 : vector<1x1x4x16xbf16> to vector<4x16xbf16>
    %cst_395 = arith.constant dense<0.000000e+00> : vector<8x16xf32>
    %462 = tpu.matmul %18, %461, %cst_395 {dimension_numbers = #tpu.dot_dimension_numbers<[1], [0], [0], [1], [0, 0, 1, 1], [], []>} : vector<8x4xbf16>, vector<4x16xbf16>, vector<8x16xf32> -> vector<8x16xf32>
    %463 = arith.addf %458, %462 : vector<8x16xf32>
    %c0_396 = arith.constant 0 : index
    %c0_397 = arith.constant 0 : index
    %c7_398 = arith.constant 7 : index
    %c0_399 = arith.constant 0 : index
    %464 = vector.load %arg4[%c0_396, %c0_397, %c7_398, %c0_399] : memref<1x8x8x16xf32, #tpu.memory_space<vmem>>, vector<1x8x1x16xf32>
    %465 = vector.shape_cast %464 : vector<1x8x1x16xf32> to vector<8x16xf32>
    %466 = vector.shape_cast %463 : vector<8x16xf32> to vector<1x8x1x16xf32>
    tpu.vector_store %arg4[%c0_396, %c0_397, %c7_398, %c0_399], %466 {strides = array<i32>} : memref<1x8x8x16xf32, #tpu.memory_space<vmem>>, vector<1x8x1x16xf32>,
    return
  }
  func.func @transform_0(%arg0: i32, %arg1: i32) -> (i32, i32, i32) {
    %c0_i32 = arith.constant 0 : i32
    %c0_i32_0 = arith.constant 0 : i32
    %c0_i32_1 = arith.constant 0 : i32
    %c0_i32_2 = arith.constant 0 : i32
    return %c0_i32, %c0_i32_0, %c0_i32_1 : i32, i32, i32
  }
  func.func @transform_1(%arg0: i32, %arg1: i32) -> (i32, i32, i32, i32) {
    %c0_i32 = arith.constant 0 : i32
    %c0_i32_0 = arith.constant 0 : i32
    %c0_i32_1 = arith.constant 0 : i32
    %c0_i32_2 = arith.constant 0 : i32
    return %arg0, %c0_i32, %c0_i32_0, %c0_i32_1 : i32, i32, i32, i32
  }
  func.func @transform_2(%arg0: i32, %arg1: i32) -> (i32, i32, i32, i32) {
    %c0_i32 = arith.constant 0 : i32
    %c0_i32_0 = arith.constant 0 : i32
    %c0_i32_1 = arith.constant 0 : i32
    return %arg0, %c0_i32, %arg1, %c0_i32_0 : i32, i32, i32, i32
  }
}

</mosaic_0001>

<bundles_post_ra>
// kernel: controlled_conv2_forward.1
= control target key start
LH: loop header
LB: loop body
LE: loop exit
PB: predicated region body
PF: predicated region fallthrough
CT: control target
= control target key end

     0   :  { %7 = vsyncpa [#allocation3], 0  ;;  %s3145_s0 = inlined_call_operand.vmem [shape: bf16[9,8,4], index: 0, kind: input, shape index: {}]   ;;  %s3146_s1 = inlined_call_operand.vmem [shape: bf16[2,18,4,18], index: 1, kind: input, shape index: {}]   ;;  %s3147_s2 = inlined_call_operand.hbm [shape: f32[2,8,16,16], index: 2, kind: output, shape index: {}]  }
   0x1   :  { %9 = vsyncpa [#allocation3 + $0x1], 0  ;;  %s2375_s9 = smov 0   ;;  %s2377_s10 = smov 0  }
   0x2   :  { %s2379_s11 = smov 0   ;;  %s2381_s12 = smov 0  }
   0x3   :  { %s2383_s13 = smov 0   ;;  %s2385_s14 = smov 0  }
   0x4   :  { %s2387_s15 = smov 0   ;;  %s2389_s16 = smov 0  }
   0x5 LB: > { %s2070_s17 = sadd.s32 4294967295, %s2353_s16   ;;  %s2071_s18 = sadd.s32 4294967294, %s2353_s16   ;;  %s2353_s16 = sphi %s2389_s16, %s15_s16   ;;  %s2349_s15 = sphi %s2387_s15, %s3158_s15   ;;  %s2345_s14 = sphi %s2385_s14, %s3157_s14   ;;  %s2341_s13 = sphi %s2383_s13, %s3156_s13   ;;  %s2337_s12 = sphi %s2381_s12, %s3155_s12   ;;  %s2333_s11 = sphi %s2379_s11, %s3154_s11   ;;  %s2329_s10 = sphi %s2377_s10, %s3153_s10   ;;  %s2325_s9 = sphi %s2375_s9, %s3152_s9  }
   0x6   : > { %s24_s19 = sadd.s32 1, %s2345_s14  ;;  %s27_s20 = sadd.s32 1, %s2349_s15 }
   0x7   : > { %p25_p0 = scmp.ge.s32.totalorder %s24_s19, 2  ;;  %p93_p1 = scmp.ne.s32.totalorder %s2333_s11, %s2329_s10 }
   0x8   : > { %p94_p2 = scmp.eq.s32.totalorder %s2070_s17, 3  ;;  %p99_p5 = scmp.ne.s32.totalorder %s2329_s10, %s2325_s9 }
   0x9   : > { %s3160_s19 = smov (%p25_p0, %s24_s19), 0  ;;  %s3162_s20 = smov (!%p25_p0, %s27_s20), %s2349_s15 }
   0xa   : > { %s79_s21 = ssub.s32 %s2345_s14, %s3160_s19  ;;  %p2426_p3 = por %p94_p2, %p93_p1 }
   0xb   : > { %p29_p4 = scmp.ge.s32.totalorder %s3162_s20, 2  ;;  %p100_p6 = scmp.eq.s32.totalorder %s2071_s18, 3 }
   0xc   : > { %p2074_p7 = scmp.ge.s32.totalorder %s2353_s16, 1  ;;  %p129_p9 = scmp.lt.s32.totalorder %s2353_s16, 5 }
   0xd   : > { %s3164_s20 = smov (%p29_p4, %s3162_s20), 0  ;;  %p2435_p8 = por %p100_p6, %p99_p5 }
   0xe   : > { %s78_s24 = ssub.s32 %s2349_s15, %s3164_s20  ;;  %s83_s25 = sadd.s32 1, %s2333_s11 }
   0xf   : > { %s80_s26 = sor.u32 %s79_s21, %s78_s24  ;;  %p130_p10 = pnand %p2074_p7, %p129_p9 }
  0x10   : > { %p81_p11 = scmp.eq.s32.totalorder %s80_s26, 0  ;;  %p151_p12 = scmp.lt.s32.totalorder (!%p130_p10), %s2341_s13, 1 }
  0x11   : > { %133 = sbr.rel (%p130_p10) target bundleno = 679 (0x2a7), region = 28  ;;  %s2448_s28 = sshll.u32 (!%p130_p10), %s2337_s12, 3 }
  0x12   : > { %s2444_s27 = scalar_select %p81_p11, %s2333_s11, %s83_s25  }
  0x13   : > { %p175_p13 = scmp.lt.s32.totalorder (!%p130_p10), %s2448_s28, 17  ;;  %s252_s17 = sadd.s32 (!%p130_p10), 1, %s2448_s28 }
  0x14   : > { %p253_p0 = scmp.lt.s32.totalorder (!%p130_p10), %s252_s17, 17  ;;  %s330_s24 = sadd.s32 (!%p130_p10), 2, %s2448_s28 }
  0x15   : > { %p331_p1 = scmp.lt.s32.totalorder (!%p130_p10), %s330_s24, 17  ;;  %s2355_s25 = smov (!%p130_p10), 126  }
  0x16   : > { %s152_s29 = scalar_select %p151_p12, %s2341_s13, 1  ;;  %vm190_vm0 = vcmask 1041408   ;;  %v2537_v40 = vld [vmem:[%s3145_s0 + $0x8] sm:$0xf]  ;;  %vm186_vm1 = vcmask 31744   ;;  %vm423_vm2 = vcmask 122880  }
  0x17   : > { %s176_s30 = scalar_select %p175_p13, %s2448_s28, 17  ;;  %v2542_v41 = vld [vmem:[%s3145_s0 + $0xc] sm:$0xf]  ;;  %v2548_v43 = vld [vmem:[%s3145_s0] sm:$0xf] }
  0x18   : > { %s2173_s3 = smul.u32 36, %s152_s29  ;;  %s3166_s17 = smov (!%p253_p0, %s252_s17), 17  ;;  %v2553_v44 = vld [vmem:[%s3145_s0 + $0x4] sm:$0xf]  ;;  %v2586_v55 = vld [vmem:[%s3145_s0 + $0x18] sm:$0xf] }
  0x19   : > { %s2086_s4 = sshll.u32 %s176_s30, 1  ;;  %s2090_s18 = sshll.u32 %s3166_s17, 1  ;;  %v2592_v58 = vld [vmem:[%s3145_s0 + $0x1c] sm:$0xf]  ;;  %v2597_v59 = vld [vmem:[%s3145_s0 + $0x14] sm:$0xf] }
  0x1a   : > { %s2456_s7 = scalar_lea.vmem %s3146_s1, %s2173_s3  ;;  %s3168_s24 = smov (!%p331_p1, %s330_s24), 17  ;;  %v2607_v61 = vld [vmem:[%s3145_s0 + $0x10] sm:$0xf] }
  0x1b   : > { %s178_s8 = scalar_lea.vmem %s2456_s7, %s2086_s4  ;;  %s256_s21 = scalar_lea.vmem %s2456_s7, %s2090_s18 }
  0x1c   : > { %v2460_v0 = vld [vmem:[%s178_s8] sm:$0x3]  ;;  %s2094_s26 = sshll.u32 %s3168_s24, 1  ;;  %s2356_s29 = smov 127  }
  0x1d   : > { %181 = vst [vmem:[#allocation1] ss:$4 sm:$0xff] %v2460_v0  ;;  %v225_v1 = vld [vmem:[%s178_s8] sm:$0x3]  ;;  %s2471_s30 = scalar_lea.vmem %s2456_s7, %s2094_s26  ;;  %s558_s3 = sadd.s32 3, %s2448_s28  ;;  %v210_v38 = vsel %vm190_vm0, %v2460_v0, 0 }
  0x1e   : > { %v2465_v3 = vld [vmem:[%s256_s21] sm:$0x3]  ;;  %p559_p2 = scmp.lt.s32.totalorder %s558_s3, 17  ;;  %s776_s6 = sadd.s32 4, %s2448_s28  ;;  %219 = vmatpush.bf16.msra.mxu1 %v210_v38 }
  0x1f   : > { %v303_v5 = vld [vmem:[%s256_s21] sm:$0x3]  ;;  %p777_p4 = scmp.lt.s32.totalorder %s776_s6, 17  ;;  %v262_v37 = vsel %vm190_vm0, %v2465_v3, 0  ;;  %s1212_s24 = sadd.s32 6, %s2448_s28 }
  0x20   : > { %v2474_v7 = vld [vmem:[%s2471_s30] sm:$0x3]  ;;  %s3170_s3 = smov (!%p559_p2, %s558_s3), 17  ;;  %271 = vmatpush.bf16.msra.mxu3 %v262_v37  ;;  %p1213_p6 = scmp.lt.s32.totalorder %s1212_s24, 17 }
  0x21   : > { %v381_v9 = vld [vmem:[%s2471_s30] sm:$0x3]  ;;  %s2104_s4 = sshll.u32 %s3170_s3, 1  ;;  %s3172_s6 = smov (!%p777_p4, %s776_s6), 17  ;;  %2088 = vmatmul.msk.bf16.vlgmr.msra.gmra.mxu1 %vm186_vm1, %v2548_v43  ;;  %v340_v52 = vsel %vm190_vm0, %v2474_v7, 0 }
  0x22   : > { %v2480_v11 = vld [vmem:[%s256_s21] sm:$0x3]  ;;  %s2495_s5 = scalar_lea.vmem %s2456_s7, %s2104_s4  ;;  %s2114_s8 = sshll.u32 %s3172_s6, 1 }
  0x23   : > { %v470_v13 = vld [vmem:[%s256_s21] sm:$0x3]  ;;  %s2520_s17 = scalar_lea.vmem %s2456_s7, %s2114_s8  ;;  %2091 = vmatmul.msk.bf16.vlgmr.msra.gmra.mxu3 %vm186_vm1, %v2542_v41  ;;  %s994_s8 = sadd.s32 5, %s2448_s28 }
  0x24   : > { %v182_v2 = vld.sshfl [vmem:[#allocation1] sm:$0xff pattern:$0x73625140]  ;;  %p2574_p5 = scmp.lt.s32.totalorder %s994_s8, 17  ;;  %s3176_s24 = smov (!%p1213_p6, %s1212_s24), 17 }
  0x25   : > { %227 = vst [vmem:[#allocation1] ss:$4 sm:$0xff] %v225_v1  ;;  %v2488_v15 = vld [vmem:[%s2471_s30] sm:$0x3]  ;;  %s1648_s6 = sadd.s32 8, %s2448_s28 }
  0x26   : > { %v534_v17 = vld [vmem:[%s2471_s30] sm:$0x3]  ;;  %s3174_s8 = smov (!%p2574_p5, %s994_s8), 17  ;;  %p1649_p9 = scmp.lt.s32.totalorder %s1648_s6, 17 }
  0x27   : > { %v2498_v19 = vld [vmem:[%s2495_s5] sm:$0x3]  ;;  %s2124_s18 = sshll.u32 %s3174_s8, 1  ;;  %s148_s8 = sand.u32 1, %s2329_s10  }
  0x28   : > { %v603_v21 = vld [vmem:[%s2495_s5] sm:$0x3]  ;;  %s3180_s6 = smov (!%p1649_p9, %s1648_s6), 17  ;;  %s2075_s21 = sshll.u32 %s148_s8, 6 }
  0x29   : > { %v2505_v23 = vld [vmem:[%s2471_s30] sm:$0x3] }
  0x2a   : > { %v688_v25 = vld [vmem:[%s2471_s30] sm:$0x3]  ;;  %s1430_s30 = sadd.s32 7, %s2448_s28 }
  0x2b   : > { %v2513_v27 = vld [vmem:[%s2495_s5] sm:$0x3]  ;;  %p1431_p7 = scmp.lt.s32.totalorder %s1430_s30, 17 }
  0x2c   : > { %v228_v4 = vld.sshfl [vmem:[#allocation1] sm:$0xff pattern:$0x73625140] }
  0x2d   : > { %230 = vrot.lane.b32.xlu0 %v228_v4, %s2355_s25  ;;  %278 = vst [vmem:[#allocation1] ss:$4 sm:$0xff] %v2465_v3  ;;  %v752_v29 = vld [vmem:[%s2495_s5] sm:$0x3]  ;;  %s3178_s30 = smov (!%p1431_p7, %s1430_s30), 17 }
  0x2e   : > { %v2523_v31 = vld [vmem:[%s2520_s17] sm:$0x3]  ;;  %s2144_s3 = sshll.u32 %s3178_s30, 1 }
  0x2f   : > { %v821_v34 = vld [vmem:[%s2520_s17] sm:$0x3]  ;;  %s2726_s4 = scalar_lea.vmem %s2456_s7, %s2144_s3  ;;  %s2279_s3 = scalar_lea.hbm %s3147_s2, 256 }
  0x30   : > { %v2556_v45 = vld [vmem:[%s2495_s5] sm:$0x3] }
  0x31   : > { %v906_v47 = vld [vmem:[%s2495_s5] sm:$0x3]  ;;  %s2618_s5 = scalar_lea.vmem %s2456_s7, %s2124_s18  ;;  %s2154_s18 = sshll.u32 %s3180_s6, 1 }
  0x32   : > { %v2572_v50 = vld [vmem:[%s2520_s17] sm:$0x3]  ;;  %s2169_s6 = sshll.u32 %s2341_s13, 4 }
  0x33   : > { %v970_v62 = vld [vmem:[%s2520_s17] sm:$0x3] }
  0x34   : > { %v279_v6 = vld.sshfl [vmem:[#allocation1] sm:$0xff pattern:$0x73625140] }
  0x35   : > { %184 = vrot.lane.b32.xlu0 %v182_v2, %s2356_s29  ;;  %305 = vst [vmem:[#allocation1] ss:$4 sm:$0xff] %v303_v5  ;;  %v2621_v0 = vld [vmem:[%s2618_s5] sm:$0x3]  ;;  %v455_v2 = vsel %vm190_vm0, %v2480_v11, 0 }
  0x3c   : > { %v306_v8 = vld.sshfl [vmem:[#allocation1] sm:$0xff pattern:$0x73625140] }
  0x3d   : > { %356 = vst [vmem:[#allocation1] ss:$4 sm:$0xff] %v2474_v7  ;;  %308 = vrot.lane.b32.xlu2 %v306_v8, %s2355_s25 }
  0x44   : > { %v357_v10 = vld.sshfl [vmem:[#allocation1] sm:$0xff pattern:$0x73625140] }
  0x45   : > { %359 = vrot.lane.b32.xlu1 %v357_v10, %s2356_s29  ;;  %383 = vst [vmem:[#allocation1] ss:$4 sm:$0xff] %v381_v9  ;;  %v2635_v9 = vld [vmem:[%s3145_s0 + $0x20] sm:$0xf] }
  0x46   : > { %v1039_v10 = vld [vmem:[%s2618_s5] sm:$0x3] }
  0x4c   : > { %v384_v12 = vld.sshfl [vmem:[#allocation1] sm:$0xff pattern:$0x73625140] }
  0x4d   : > { %281 = vrot.lane.b32.xlu1 %v279_v6, %s2356_s29  ;;  %386 = vrot.lane.b32.xlu0 %v384_v12, %s2355_s25  ;;  %434 = vst [vmem:[#allocation1] ss:$4 sm:$0xff] %v2480_v11 }
  0x54   : > { %v435_v14 = vld.sshfl [vmem:[#allocation1] sm:$0xff pattern:$0x73625140] }
  0x55   : > { %437 = vrot.lane.b32.xlu1 %v435_v14, %s2356_s29  ;;  %472 = vst [vmem:[#allocation1] ss:$4 sm:$0xff] %v470_v13  ;;  %v2647_v14 = vld [vmem:[%s2520_s17] sm:$0x3] }
  0x5c   : > { %v473_v16 = vld.sshfl [vmem:[#allocation1] sm:$0xff pattern:$0x73625140] }
  0x5d   : > { %512 = vst [vmem:[#allocation1] ss:$4 sm:$0xff] %v2488_v15  ;;  %475 = vrot.lane.b32.xlu2 %v473_v16, %s2355_s25 }
  0x64   : > { %v513_v18 = vld.sshfl [vmem:[#allocation1] sm:$0xff pattern:$0x73625140] }
  0x65   : > { %515 = vrot.lane.b32.xlu0 %v513_v18, %s2356_s29  ;;  %536 = vst [vmem:[#allocation1] ss:$4 sm:$0xff] %v534_v17  ;;  %v496_v18 = vsel %vm190_vm0, %v2488_v15, 0 }
  0x6c   : > { %v537_v20 = vld.sshfl [vmem:[#allocation1] sm:$0xff pattern:$0x73625140] }
  0x6d   : > { %581 = vst [vmem:[#allocation1] ss:$4 sm:$0xff] %v2498_v19  ;;  %539 = vrot.lane.b32.xlu2 %v537_v20, %s2355_s25  ;;  %v565_v20 = vsel %vm190_vm0, %v2498_v19, 0  ;;  %v2668_v19 = vld [vmem:[%s2618_s5] sm:$0x3] }
  0x74   : > { %v582_v22 = vld.sshfl [vmem:[#allocation1] sm:$0xff pattern:$0x73625140] }
  0x75   : > { %605 = vst [vmem:[#allocation1] ss:$4 sm:$0xff] %v603_v21  ;;  %584 = vrot.lane.b32.xlu2 %v582_v22, %s2356_s29  ;;  %v1124_v22 = vld [vmem:[%s2520_s17] sm:$0x3]  ;;  %s2134_s17 = sshll.u32 %s3176_s24, 1  ;;  %s2832_s24 = scalar_lea.vmem [#allocation2], %s2075_s21 }
  0x76   : > { %s2681_s26 = scalar_lea.vmem %s2456_s7, %s2134_s17  ;;  %s1866_s17 = sadd.s32 9, %s2448_s28 }
  0x77   : > { %p2853_p10 = scmp.lt.s32.totalorder %s1866_s17, 17 }
  0x79   : > { %s3182_s17 = smov (!%p2853_p10, %s1866_s17), 17 }
  0x7a   : > { %s2164_s28 = sshll.u32 %s3182_s17, 1 }
  0x7b   : > { %s1870_s30 = scalar_lea.vmem %s2456_s7, %s2164_s28  ;;  %s1959_s28 = scalar_lea.sflag [#allocation3], %s148_s8 }
  0x7c   : > { %v606_v24 = vld.sshfl [vmem:[#allocation1] sm:$0xff pattern:$0x73625140] }
  0x7d   : > { %652 = vst [vmem:[#allocation1] ss:$4 sm:$0xff] %v2505_v23  ;;  %608 = vrot.lane.b32.xlu0 %v606_v24, %s2355_s25 }
  0x84   : > { %v653_v26 = vld.sshfl [vmem:[#allocation1] sm:$0xff pattern:$0x73625140] }
  0x85   : > { %655 = vrot.lane.b32.xlu1 %v653_v26, %s2356_s29  ;;  %690 = vst [vmem:[#allocation1] ss:$4 sm:$0xff] %v688_v25 }
  0x8c   : > { %v691_v28 = vld.sshfl [vmem:[#allocation1] sm:$0xff pattern:$0x73625140] }
  0x8d   : > { %730 = vst [vmem:[#allocation1] ss:$4 sm:$0xff] %v2513_v27  ;;  %693 = vrot.lane.b32.xlu0 %v691_v28, %s2355_s25  ;;  %v1188_v28 = vld [vmem:[%s2618_s5] sm:$0x3] }
  0x94   : > { %v731_v30 = vld.sshfl [vmem:[#allocation1] sm:$0xff pattern:$0x73625140] }
  0x95   : > { %733 = vrot.lane.b32.xlu1 %v731_v30, %s2356_s29  ;;  %754 = vst [vmem:[#allocation1] ss:$4 sm:$0xff] %v752_v29  ;;  %v673_v30 = vsel %vm190_vm0, %v2505_v23, 0  ;;  %v2688_v23 = vld [vmem:[%s2681_s26] sm:$0x3] }
  0x97   : > { %v309_v54 = vpop.permute.xlu2 %308 }
  0x98   : > { %v314_v56 = vsel %vm190_vm0, %v309_v54, 0 }
  0x99   : > { %323 = vmatpush.bf16.msrb.mxu1 %v314_v56  ;;  %v714_v56 = vsel %vm190_vm0, %v2513_v27, 0  ;;  %v2729_v27 = vld [vmem:[%s2726_s4] sm:$0x3] }
  0x9c   : > { %v755_v32 = vld.sshfl [vmem:[#allocation1] sm:$0xff pattern:$0x73625140]  ;;  %2093 = vmatmul.msk.bf16.vlgmr.msrb.gmra.mxu1 %vm186_vm1, %v2597_v59 }
  0x9d   : > { %799 = vst [vmem:[#allocation1] ss:$4 sm:$0xff] %v2523_v31  ;;  %757 = vrot.lane.b32.xlu2 %v755_v32, %s2355_s25 }
  0x9f   : > { %v231_v33 = vpop.permute.xlu0 %230 }
  0xa0   : > { %v236_v36 = vsel %vm190_vm0, %v231_v33, 0 }
  0xa1   : > { %245 = vmatpush.bf16.msra.mxu2 %v236_v36 }
  0xa4   : > { %v800_v35 = vld.sshfl [vmem:[#allocation1] sm:$0xff pattern:$0x73625140]  ;;  %2089 = vmatmul.msk.bf16.vlgmr.msra.gmra.mxu2 %vm186_vm1, %v2537_v40 }
  0xa5   : > { %823 = vst [vmem:[#allocation1] ss:$4 sm:$0xff] %v821_v34  ;;  %802 = vrot.lane.b32.xlu0 %v800_v35, %s2356_s29  ;;  %349 = vmatpush.bf16.msrb.mxu2 %v340_v52 }
  0xa7   : > { %v185_v39 = vpop.permute.xlu0 %184 }
  0xa8   : > { %v192_v42 = vsel %vm190_vm0, %v185_v39, 0 }
  0xa9   : > { %201 = vmatpush.bf16.msra.mxu0 %v192_v42  ;;  %464 = vmatpush.bf16.msra.mxu2 %v455_v2 }
  0xac   : > { %v824_v46 = vld.sshfl [vmem:[#allocation1] sm:$0xff pattern:$0x73625140]  ;;  %2087 = vmatmul.msk.bf16.vlgmr.msra.gmra.mxu0 %vm186_vm1, %v2553_v44 }
  0xad   : > { %826 = vrot.lane.b32.xlu1 %v824_v46, %s2355_s25  ;;  %870 = vst [vmem:[#allocation1] ss:$4 sm:$0xff] %v2556_v45  ;;  %v1257_v46 = vld [vmem:[%s2681_s26] sm:$0x3] }
  0xb4   : > { %v871_v48 = vld.sshfl [vmem:[#allocation1] sm:$0xff pattern:$0x73625140]  ;;  %2095 = vmatmul.msk.bf16.vlgmr.msrb.gmra.mxu2 %vm186_vm1, %v2586_v55 }
  0xb5   : > { %908 = vst [vmem:[#allocation1] ss:$4 sm:$0xff] %v906_v47  ;;  %873 = vrot.lane.b32.xlu2 %v871_v48, %s2356_s29 }
  0xb7   : > { %v360_v49 = vpop.permute.xlu1 %359  ;;  %v476_v4 = vpop.permute.xlu2 %475 }
  0xb8   : > { %v365_v53 = vsel %vm190_vm0, %v360_v49, 0  ;;  %v478_v6 = vsel %vm190_vm0, %v476_v4, 0 }
  0xb9   : > { %374 = vmatpush.bf16.msrb.mxu3 %v365_v53  ;;  %v1342_v53 = vld [vmem:[%s2618_s5] sm:$0x3] }
  0xbc   : > { %v909_v51 = vld.sshfl [vmem:[#allocation1] sm:$0xff pattern:$0x73625140]  ;;  %2096 = vmatmul.msk.bf16.vlgmr.msrb.gmra.mxu3 %vm186_vm1, %v2592_v58 }
  0xbd   : > { %948 = vst [vmem:[#allocation1] ss:$4 sm:$0xff] %v2572_v50  ;;  %911 = vrot.lane.b32.xlu2 %v909_v51, %s2355_s25  ;;  %487 = vmatpush.bf16.msra.mxu3 %v478_v6  ;;  %v2705_v51 = vld [vmem:[%s2618_s5] sm:$0x3]  ;;  %s2791_s5 = scalar_lea.vmem %s2456_s7, %s2154_s18  ;;  %s1969_s18 = sadd.s32 %s2337_s12, %s2169_s6 }
  0xbe   : > { %s1972_s12 = sshll.u32 %s2832_s24, 4  ;;  %s1973_s12 = int_to_ptr.vmem [resolvable:$true] %s1972_s12 }
  0xbf   : > { %v282_v57 = vpop.permute.xlu1 %281  ;;  %v387_v3 = vpop.permute.xlu0 %386 }
  0xc0   : > { %v287_v60 = vsel %vm190_vm0, %v282_v57, 0  ;;  %v392_v5 = vsel %vm190_vm0, %v387_v3, 0  ;;  %v2719_v57 = vld [vmem:[%s2681_s26] sm:$0x3] }
  0xc1   : > { %296 = vmatpush.bf16.msrb.mxu0 %v287_v60  ;;  %574 = vmatpush.bf16.msrb.mxu3 %v565_v20 }
  0xc4   : > { %v949_v63 = vld.sshfl [vmem:[#allocation1] sm:$0xff pattern:$0x73625140]  ;;  %2092 = vmatmul.msk.bf16.vlgmr.msrb.gmra.mxu0 %vm186_vm1, %v2607_v61  ;;  %2099 = vmatmul.msk.bf16.vlgmr.msra.gmra.mxu2 %vm186_vm1, %v2548_v43 }
  0xc5   : > { %951 = vrot.lane.b32.xlu1 %v949_v63, %s2356_s29  ;;  %972 = vst [vmem:[#allocation1] ss:$4 sm:$0xff] %v970_v62  ;;  %401 = vmatpush.bf16.msra.mxu0 %v392_v5  ;;  %v1406_v62 = vld [vmem:[%s2681_s26] sm:$0x3]  ;;  %v783_v5 = vsel %vm190_vm0, %v2523_v31, 0 }
  0xc6   : > { %v1475_v31 = vld [vmem:[%s2726_s4] sm:$0x3] }
  0xc7   : > { %v438_v7 = vpop.permute.xlu1 %437  ;;  %v540_v12 = vpop.permute.xlu2 %539 }
  0xc8   : > { %v440_v8 = vsel %vm190_vm0, %v438_v7, 0  ;;  %v542_v13 = vsel %vm190_vm0, %v540_v12, 0 }
  0xc9   : > { %449 = vmatpush.bf16.msra.mxu1 %v440_v8  ;;  %551 = vmatpush.bf16.msrb.mxu2 %v542_v13  ;;  %v932_v13 = vsel %vm190_vm0, %v2572_v50, 0  ;;  %v1560_v50 = vld [vmem:[%s2681_s26] sm:$0x3] }
  0xca   : > { %505 = vmatpush.bf16.msrb.mxu0 %v496_v18  ;;  %v891_v18 = vsel %vm190_vm0, %v2556_v45, 0  ;;  %v2771_v45 = vld [vmem:[%s2726_s4] sm:$0x3] }
  0xcc   : > { %v973_v1 = vld.sshfl [vmem:[#allocation1] sm:$0xff pattern:$0x73625140]  ;;  %2100 = vmatmul.msk.bf16.vlgmr.msra.gmra.mxu3 %vm186_vm1, %v2537_v40  ;;  %2098 = vmatmul.msk.bf16.vlgmr.msra.gmra.mxu1 %vm186_vm1, %v2553_v44 }
  0xcd   : > { %1017 = vst [vmem:[#allocation1] ss:$4 sm:$0xff] %v2621_v0  ;;  %975 = vrot.lane.b32.xlu2 %v973_v1, %s2355_s25  ;;  %682 = vmatpush.bf16.msra.mxu3 %v673_v30 }
  0xcf   : > { %v585_v25 = vpop.permute.xlu2 %584 }
  0xd0   : > { %v587_v26 = vsel %vm190_vm0, %v585_v25, 0 }
  0xd4   : > { %v1018_v11 = vld.sshfl [vmem:[#allocation1] sm:$0xff pattern:$0x73625140]  ;;  %2097 = vmatmul.msk.bf16.vlgmr.msra.gmra.mxu0 %vm186_vm1, %v2635_v9  ;;  %2103 = vmatmul.msk.bf16.vlgmr.msrb.gmra.mxu2 %vm186_vm1, %v2597_v59 }
  0xd5   : > { %1020 = vrot.lane.b32.xlu0 %v1018_v11, %s2356_s29  ;;  %1041 = vst [vmem:[#allocation1] ss:$4 sm:$0xff] %v1039_v10  ;;  %596 = vmatpush.bf16.msra.mxu0 %v587_v26  ;;  %v2749_v11 = vld [vmem:[%s2681_s26] sm:$0x3] }
  0xd7   : > { %v516_v17 = vpop.permute.xlu0 %515 }
  0xd8   : > { %v518_v21 = vsel %vm190_vm0, %v516_v17, 0 }
  0xd9   : > { %527 = vmatpush.bf16.msrb.mxu1 %v518_v21 }
  0xdc   : > { %v1042_v16 = vld.sshfl [vmem:[#allocation1] sm:$0xff pattern:$0x73625140]  ;;  %2105 = vmatmul.msk.bf16.vlgmr.msrb.gmra.mxu3 %vm186_vm1, %v2586_v55  ;;  %2102 = vmatmul.msk.bf16.vlgmr.msrb.gmra.mxu1 %vm186_vm1, %v2607_v61 }
  0xdd   : > { %1044 = vrot.lane.b32.xlu1 %v1042_v16, %s2355_s25  ;;  %1088 = vst [vmem:[#allocation1] ss:$4 sm:$0xff] %v2647_v14 }
  0xe4   : > { %v1089_v15 = vld.sshfl [vmem:[#allocation1] sm:$0xff pattern:$0x73625140]  ;;  %2101 = vmatmul.msk.bf16.vlgmr.msrb.gmra.mxu0 %vm186_vm1, %v2542_v41 }
  0xe5   : > { %1126 = vst [vmem:[#allocation1] ss:$4 sm:$0xff] %v1124_v22  ;;  %1091 = vrot.lane.b32.xlu1 %v1089_v15, %s2356_s29 }
  0xec   : > { %v1127_v24 = vld.sshfl [vmem:[#allocation1] sm:$0xff pattern:$0x73625140]  ;;  %2109 = vmatmul.msk.bf16.vlgmr.msra.gmra.mxu3 %vm186_vm1, %v2548_v43 }
  0xed   : > { %1129 = vrot.lane.b32.xlu0 %v1127_v24, %s2355_s25  ;;  %1166 = vst [vmem:[#allocation1] ss:$4 sm:$0xff] %v2668_v19 }
  0xef   : > { %v609_v32 = vpop.permute.xlu0 %608 }
  0xf0   : > { %v611_v33 = vsel %vm190_vm0, %v609_v32, 0 }
  0xf1   : > { %620 = vmatpush.bf16.msra.mxu1 %v611_v33  ;;  %v1001_v33 = vsel %vm190_vm0, %v2621_v0, 0  ;;  %v273_v0 = vpop.f32.mrf.mxu3 }
  0xf4   : > { %v1167_v29 = vld.sshfl [vmem:[#allocation1] sm:$0xff pattern:$0x73625140]  ;;  %2106 = vmatmul.msk.bf16.vlgmr.msra.gmra.mxu0 %vm186_vm1, %v2592_v58  ;;  %2107 = vmatmul.msk.bf16.vlgmr.msra.gmra.mxu1 %vm186_vm1, %v2635_v9 }
  0xf5   : > { %1169 = vrot.lane.b32.xlu0 %v1167_v29, %s2356_s29  ;;  %1190 = vst [vmem:[#allocation1] ss:$4 sm:$0xff] %v1188_v28  ;;  %723 = vmatpush.bf16.msrb.mxu1 %v714_v56 }
  0xf7   : > { %v656_v34 = vpop.permute.xlu1 %655  ;;  %v758_v35 = vpop.permute.xlu2 %757 }
  0xf8   : > { %v658_v36 = vsel %vm190_vm0, %v656_v34, 0  ;;  %v760_v37 = vsel %vm190_vm0, %v758_v35, 0  ;;  %v221_v34 = vpop.f32.mrf.mxu1  ;;  %v1624_v35 = vld [vmem:[%s2726_s4] sm:$0x3] }
  0xf9   : > { %667 = vmatpush.bf16.msra.mxu2 %v658_v36  ;;  %769 = vmatpush.bf16.msrb.mxu3 %v760_v37 }
  0xfc   : > { %v1191_v38 = vld.sshfl [vmem:[#allocation1] sm:$0xff pattern:$0x73625140]  ;;  %2108 = vmatmul.msk.bf16.vlgmr.msra.gmra.mxu2 %vm186_vm1, %v2553_v44  ;;  %2113 = vmatmul.msk.bf16.vlgmr.msrb.gmra.mxu3 %vm186_vm1, %v2597_v59 }
  0xfd   : > { %1193 = vrot.lane.b32.xlu1 %v1191_v38, %s2355_s25  ;;  %1235 = vst [vmem:[#allocation1] ss:$4 sm:$0xff] %v2688_v23 }
  0xff   : > { %v694_v39 = vpop.permute.xlu0 %693 }
 0x100   : > { %v696_v42 = vsel %vm190_vm0, %v694_v39, 0  ;;  %v223_v39 = vpop.f32.mrf.mxu1 }
 0x101   : > { %705 = vmatpush.bf16.msrb.mxu0 %v696_v42  ;;  %v2794_v42 = vld [vmem:[%s2791_s5] sm:$0x3] }
 0x104   : > { %v1236_v47 = vld.sshfl [vmem:[#allocation1] sm:$0xff pattern:$0x73625140]  ;;  %2110 = vmatmul.msk.bf16.vlgmr.msrb.gmra.mxu0 %vm186_vm1, %v2537_v40  ;;  %2111 = vmatmul.msk.bf16.vlgmr.msrb.gmra.mxu1 %vm186_vm1, %v2542_v41 }
 0x105   : > { %1259 = vst [vmem:[#allocation1] ss:$4 sm:$0xff] %v1257_v46  ;;  %1238 = vrot.lane.b32.xlu2 %v1236_v47, %s2356_s29  ;;  %792 = vmatpush.bf16.msra.mxu0 %v783_v5 }
 0x107   : > { %v734_v48 = vpop.permute.xlu1 %733 }
 0x108   : > { %v736_v49 = vsel %vm190_vm0, %v734_v48, 0 }
 0x109   : > { %745 = vmatpush.bf16.msrb.mxu2 %v736_v49  ;;  %900 = vmatpush.bf16.msrb.mxu0 %v891_v18 }
 0x10c   : > { %v1260_v52 = vld.sshfl [vmem:[#allocation1] sm:$0xff pattern:$0x73625140]  ;;  %2112 = vmatmul.msk.bf16.vlgmr.msrb.gmra.mxu2 %vm186_vm1, %v2607_v61 }
 0x10d   : > { %1262 = vrot.lane.b32.xlu0 %v1260_v52, %s2355_s25  ;;  %1306 = vst [vmem:[#allocation1] ss:$4 sm:$0xff] %v2705_v51  ;;  %v275_v52 = vpop.f32.mrf.mxu3 }
 0x10f   : > { %v874_v4 = vpop.permute.xlu2 %873 }
 0x110   : > { %v876_v7 = vsel %vm190_vm0, %v874_v4, 0 }
 0x111   : > { %885 = vmatpush.bf16.msra.mxu3 %v876_v7 }
 0x114   : > { %v1307_v54 = vld.sshfl [vmem:[#allocation1] sm:$0xff pattern:$0x73625140]  ;;  %2115 = vmatmul.msk.bf16.vlgmr.msra.gmra.mxu0 %vm186_vm1, %v2586_v55  ;;  %2118 = vmatmul.msk.bf16.vlgmr.msra.gmra.mxu3 %vm186_vm1, %v2553_v44 }
 0x115   : > { %1309 = vrot.lane.b32.xlu1 %v1307_v54, %s2356_s29  ;;  %1344 = vst [vmem:[#allocation1] ss:$4 sm:$0xff] %v1342_v53 }
 0x117   : > { %v803_v6 = vpop.permute.xlu0 %802  ;;  %v912_v20 = vpop.permute.xlu2 %911 }
 0x118   : > { %v805_v8 = vsel %vm190_vm0, %v803_v6, 0  ;;  %v914_v21 = vsel %vm190_vm0, %v912_v20, 0 }
 0x119   : > { %814 = vmatpush.bf16.msra.mxu1 %v805_v8  ;;  %v1150_v8 = vsel %vm190_vm0, %v2668_v19, 0 }
 0x11c   : > { %v1345_v60 = vld.sshfl [vmem:[#allocation1] sm:$0xff pattern:$0x73625140]  ;;  %2116 = vmatmul.msk.bf16.vlgmr.msra.gmra.mxu1 %vm186_vm1, %v2592_v58 }
 0x11d   : > { %1384 = vst [vmem:[#allocation1] ss:$4 sm:$0xff] %v2719_v57  ;;  %1347 = vrot.lane.b32.xlu2 %v1345_v60, %s2355_s25  ;;  %923 = vmatpush.bf16.msrb.mxu1 %v914_v21 }
 0x11f   : > { %v827_v1 = vpop.permute.xlu1 %826 }
 0x120   : > { %v829_v3 = vsel %vm190_vm0, %v827_v1, 0  ;;  %v1693_v1 = vld [vmem:[%s2791_s5] sm:$0x3] }
 0x121   : > { %838 = vmatpush.bf16.msra.mxu2 %v829_v3  ;;  %1010 = vmatpush.bf16.msra.mxu1 %v1001_v33 }
 0x124   : > { %v1385_v63 = vld.sshfl [vmem:[#allocation1] sm:$0xff pattern:$0x73625140]  ;;  %2117 = vmatmul.msk.bf16.vlgmr.msra.gmra.mxu2 %vm186_vm1, %v2635_v9  ;;  %2119 = vmatmul.msk.bf16.vlgmr.msrb.gmra.mxu0 %vm186_vm1, %v2548_v43 }
 0x125   : > { %1387 = vrot.lane.b32.xlu0 %v1385_v63, %s2356_s29  ;;  %1408 = vst [vmem:[#allocation1] ss:$4 sm:$0xff] %v1406_v62  ;;  %941 = vmatpush.bf16.msrb.mxu2 %v932_v13  ;;  %v325_v63 = vpop.f32.mrf.mxu1 }
 0x127   : > { %v976_v26 = vpop.permute.xlu2 %975  ;;  %v247_v36 = vpop.f32.mrf.mxu2 }
 0x128   : > { %v978_v28 = vsel %vm190_vm0, %v976_v26, 0 }
 0x129   : > { %v203_v30 = vpop.f32.mrf.mxu0  ;;  %987 = vmatpush.bf16.msra.mxu0 %v978_v28 }
 0x12a   : > { %v222_v48 = vadd.f32 %v221_v34, %v203_v30 }
 0x12c   : > { %v1409_v2 = vld.sshfl [vmem:[#allocation1] sm:$0xff pattern:$0x73625140]  ;;  %2120 = vmatmul.msk.bf16.vlgmr.msrb.gmra.mxu1 %vm186_vm1, %v2537_v40  ;;  %v251_v60 = vadd.f32 %v247_v36, %v222_v48 }
 0x12d   : > { %1453 = vst [vmem:[#allocation1] ss:$4 sm:$0xff] %v2729_v27  ;;  %1411 = vrot.lane.b32.xlu2 %v1409_v2, %s2355_s25  ;;  %v1109_v2 = vsel %vm190_vm0, %v2647_v14, 0 }
 0x12e   : > { %1118 = vmatpush.bf16.msrb.mxu1 %v1109_v2  ;;  %v277_v5 = vadd.f32 %v273_v0, %v251_v60 }
 0x12f   : > { %v249_v46 = vpop.f32.mrf.mxu2 }
 0x131   : > { %v205_v38 = vpop.f32.mrf.mxu0 }
 0x134   : > { %v1454_v10 = vld.sshfl [vmem:[#allocation1] sm:$0xff pattern:$0x73625140]  ;;  %2121 = vmatmul.msk.bf16.vlgmr.msrb.gmra.mxu2 %vm186_vm1, %v2542_v41  ;;  %2123 = vmatmul.msk.bf16.vlgmr.msra.gmra.mxu0 %vm186_vm1, %v2597_v59 }
 0x135   : > { %1477 = vst [vmem:[#allocation1] ss:$4 sm:$0xff] %v1475_v31  ;;  %1456 = vrot.lane.b32.xlu2 %v1454_v10, %s2356_s29  ;;  %v327_v31 = vpop.f32.mrf.mxu1  ;;  %v2813_v10 = vld [vmem:[%s2726_s4] sm:$0x3] }
 0x137   : > { %v952_v16 = vpop.permute.xlu1 %951  ;;  %v351_v3 = vpop.f32.mrf.mxu2 }
 0x138   : > { %v954_v17 = vsel %vm190_vm0, %v952_v16, 0 }
 0x139   : > { %963 = vmatpush.bf16.msrb.mxu3 %v954_v17 }
 0x13c   : > { %v1478_v12 = vld.sshfl [vmem:[#allocation1] sm:$0xff pattern:$0x73625140]  ;;  %2122 = vmatmul.msk.bf16.vlgmr.msrb.gmra.mxu3 %vm186_vm1, %v2607_v61  ;;  %2125 = vmatmul.msk.bf16.vlgmr.msra.gmra.mxu1 %vm186_vm1, %v2586_v55 }
 0x13d   : > { %1524 = vst [vmem:[#allocation1] ss:$4 sm:$0xff] %v2749_v11  ;;  %1480 = vrot.lane.b32.xlu0 %v1478_v12, %s2355_s25 }
 0x13f   : > { %v376_v6 = vpop.f32.mrf.mxu3  ;;  %v353_v12 = vpop.f32.mrf.mxu2 }
 0x141   : > { %v298_v56 = vpop.f32.mrf.mxu0 }
 0x142   : > { %v302_v7 = vadd.f32 %v298_v56, %v277_v5  ;;  %v1327_v56 = vsel %vm190_vm0, %v2705_v51, 0 }
 0x144   : > { %v1525_v22 = vld.sshfl [vmem:[#allocation1] sm:$0xff pattern:$0x73625140]  ;;  %v329_v16 = vadd.f32 %v325_v63, %v302_v7 }
 0x145   : > { %1527 = vrot.lane.b32.xlu1 %v1525_v22, %s2356_s29  ;;  %1562 = vst [vmem:[#allocation1] ss:$4 sm:$0xff] %v1560_v50  ;;  %v1219_v50 = vsel %vm190_vm0, %v2688_v23, 0 }
 0x146   : > { %v355_v18 = vadd.f32 %v351_v3, %v329_v16 }
 0x147   : > { %v1021_v15 = vpop.permute.xlu0 %1020  ;;  %v378_v17 = vpop.f32.mrf.mxu3 }
 0x148   : > { %v1023_v25 = vsel %vm190_vm0, %v1021_v15, 0  ;;  %v380_v21 = vadd.f32 %v376_v6, %v355_v18 }
 0x149   : > { %1032 = vmatpush.bf16.msra.mxu2 %v1023_v25  ;;  %v300_v14 = vpop.f32.mrf.mxu0  ;;  %v1778_v25 = vld [vmem:[%s2726_s4] sm:$0x3] }
 0x14a   : > { %v1842_v14 = vld [vmem:[%s2791_s5] sm:$0x3] }
 0x14c   : > { %v1563_v24 = vld.sshfl [vmem:[#allocation1] sm:$0xff pattern:$0x73625140]  ;;  %2126 = vmatmul.msk.bf16.vlgmr.msra.gmra.mxu2 %vm186_vm1, %v2592_v58  ;;  %2129 = vmatmul.msk.bf16.vlgmr.msrb.gmra.mxu1 %vm186_vm1, %v2548_v43 }
 0x14d   : > { %1602 = vst [vmem:[#allocation1] ss:$4 sm:$0xff] %v2771_v45  ;;  %1565 = vrot.lane.b32.xlu0 %v1563_v24, %s2355_s25  ;;  %v451_v24 = vpop.f32.mrf.mxu1 }
 0x14f   : > { %v1045_v29 = vpop.permute.xlu1 %1044  ;;  %v489_v34 = vpop.f32.mrf.mxu3 }
 0x150   : > { %v1047_v32 = vsel %vm190_vm0, %v1045_v29, 0  ;;  %v466_v29 = vpop.f32.mrf.mxu2 }
 0x151   : > { %1056 = vmatpush.bf16.msra.mxu3 %v1047_v32  ;;  %v403_v20 = vpop.f32.mrf.mxu0 }
 0x152   : > { %v407_v26 = vadd.f32 %v403_v20, %v380_v21 }
 0x154   : > { %v1603_v37 = vld.sshfl [vmem:[#allocation1] sm:$0xff pattern:$0x73625140]  ;;  %2127 = vmatmul.msk.bf16.vlgmr.msra.gmra.mxu3 %vm186_vm1, %v2635_v9  ;;  %v409_v32 = vrot.slane %v407_v26, 1  ;;  %v410_v23 = vrot.slane %v407_v26, 2  ;;  %v411_v33 = vrot.slane %v407_v26, 3 }
 0x155   : > { %1605 = vrot.lane.b32.xlu1 %v1603_v37, %s2356_s29  ;;  %1626 = vst [vmem:[#allocation1] ss:$4 sm:$0xff] %v1624_v35  ;;  %1159 = vmatpush.bf16.msrb.mxu3 %v1150_v8  ;;  %v412_v35 = vrot.slane %v407_v26, 4  ;;  %v413_v36 = vrot.slane %v407_v26, 5  ;;  %v414_v38 = vrot.slane %v407_v26, 6  ;;  %v453_v46 = vpop.f32.mrf.mxu1  ;;  %v415_v48 = vrot.slane %v407_v26, 7 }
 0x156   : > { %424 = vst.msk [vmem:[%s2832_s24] sm:$0x1] %vm423_vm2, %v407_v26 }
 0x157   : > { %v1092_v49 = vpop.permute.xlu1 %1091  ;;  %425 = vst.msk [vmem:[%s2832_s24 + $0x8] sm:$0x1] %vm423_vm2, %v409_v32 }
 0x158   : > { %v1094_v53 = vsel %vm190_vm0, %v1092_v49, 0  ;;  %426 = vst.msk [vmem:[%s2832_s24 + $0x10] sm:$0x1] %vm423_vm2, %v410_v23  ;;  %v468_v49 = vpop.f32.mrf.mxu2 }
 0x159   : > { %1103 = vmatpush.bf16.msrb.mxu0 %v1094_v53  ;;  %v405_v0 = vpop.f32.mrf.mxu0  ;;  %427 = vst.msk [vmem:[%s2832_s24 + $0x18] sm:$0x1] %vm423_vm2, %v411_v33  ;;  %v467_v53 = vadd.f32 %v466_v29, %v451_v24 }
 0x15a   : > { %428 = vst.msk [vmem:[%s2832_s24 + $0x20] sm:$0x1] %vm423_vm2, %v412_v35 }
 0x15b   : > { %429 = vst.msk [vmem:[%s2832_s24 + $0x28] sm:$0x1] %vm423_vm2, %v413_v36  ;;  %v493_v60 = vadd.f32 %v489_v34, %v467_v53 }
 0x15c   : > { %v1627_v47 = vld.sshfl [vmem:[#allocation1] sm:$0xff pattern:$0x73625140]  ;;  %2128 = vmatmul.msk.bf16.vlgmr.msrb.gmra.mxu0 %vm186_vm1, %v2553_v44  ;;  %430 = vst.msk [vmem:[%s2832_s24 + $0x30] sm:$0x1] %vm423_vm2, %v414_v38 }
 0x15d   : > { %1671 = vst [vmem:[#allocation1] ss:$4 sm:$0xff] %v2794_v42  ;;  %1629 = vrot.lane.b32.xlu2 %v1627_v47, %s2355_s25  ;;  %v2847_v47 = vld [vmem:[%s2791_s5] sm:$0x3]  ;;  %v529_v51 = vpop.f32.mrf.mxu1  ;;  %s2170_s5 = sshll.u32 %s1969_s18, 3 }
 0x15e   : > { %431 = vst.msk [vmem:[%s2832_s24 + $0x38] sm:$0x1] %vm423_vm2, %v415_v48  ;;  %s1971_s26 = scalar_lea.hbm %s3147_s2, %s2170_s5 }
 0x15f   : > { %v1130_v54 = vpop.permute.xlu0 %1129  ;;  %v1239_v37 = vpop.permute.xlu2 %1238  ;;  %s1974_s13 = sshll.u32 %s1971_s26, 4  ;;  %s1975_s13 = int_to_ptr.hbm [resolvable:$true] %s1974_s13 }
 0x160   : > { %v1132_v62 = vsel %vm190_vm0, %v1130_v54, 0  ;;  %v1241_v39 = vsel %vm190_vm0, %v1239_v37, 0  ;;  %v491_v54 = vpop.f32.mrf.mxu3  ;;  %v553_v7 = vpop.f32.mrf.mxu2 }
 0x161   : > { %1141 = vmatpush.bf16.msrb.mxu2 %v1132_v62  ;;  %1250 = vmatpush.bf16.msra.mxu3 %v1241_v39  ;;  %v507_v63 = vpop.f32.mrf.mxu0 }
 0x162   : > { %v511_v5 = vadd.f32 %v507_v63, %v493_v60 }
 0x164   : > { %v1672_v4 = vld.sshfl [vmem:[#allocation1] sm:$0xff pattern:$0x73625140]  ;;  %2130 = vmatmul.msk.bf16.vlgmr.msrb.gmra.mxu2 %vm186_vm1, %v2537_v40  ;;  %2131 = vmatmul.msk.bf16.vlgmr.msrb.gmra.mxu3 %vm186_vm1, %v2542_v41  ;;  %v533_v8 = vadd.f32 %v529_v51, %v511_v5 }
 0x165   : > { %1695 = vst [vmem:[#allocation1] ss:$4 sm:$0xff] %v1693_v1  ;;  %1674 = vrot.lane.b32.xlu0 %v1672_v4, %s2356_s29  ;;  %1228 = vmatpush.bf16.msra.mxu2 %v1219_v50  ;;  %v1368_v1 = vsel %vm190_vm0, %v2719_v57, 0  ;;  %v1437_v4 = vsel %vm190_vm0, %v2729_v27, 0  ;;  %v531_v17 = vpop.f32.mrf.mxu1 }
 0x166   : > { %v557_v16 = vadd.f32 %v553_v7, %v533_v8 }
 0x167   : > { %v1170_v19 = vpop.permute.xlu0 %1169 }
 0x168   : > { %v1172_v22 = vsel %vm190_vm0, %v1170_v19, 0  ;;  %v576_v27 = vpop.f32.mrf.mxu3  ;;  %v2883_v19 = vld [vmem:[%s1870_s30] sm:$0x3]  ;;  %v555_v21 = vpop.f32.mrf.mxu2 }
 0x169   : > { %1181 = vmatpush.bf16.msra.mxu0 %v1172_v22  ;;  %1336 = vmatpush.bf16.msrb.mxu2 %v1327_v56  ;;  %v509_v12 = vpop.f32.mrf.mxu0  ;;  %v580_v22 = vadd.f32 %v576_v27, %v557_v16 }
 0x16a   : > { %v1586_v12 = vsel %vm190_vm0, %v2771_v45, 0 }
 0x16c   : > { %v1696_v13 = vld.sshfl [vmem:[#allocation1] sm:$0xff pattern:$0x73625140]  ;;  %2132 = vmatmul.msk.bf16.vlgmr.msra.gmra.mxu0 %vm186_vm1, %v2607_v61 }
 0x16d   : > { %1698 = vrot.lane.b32.xlu1 %v1696_v13, %s2355_s25  ;;  %1742 = vst [vmem:[#allocation1] ss:$4 sm:$0xff] %v2813_v10 }
 0x16f   : > { %v1194_v15 = vpop.permute.xlu1 %1193 }
 0x170   : > { %v1196_v28 = vsel %vm190_vm0, %v1194_v15, 0  ;;  %v578_v15 = vpop.f32.mrf.mxu3 }
 0x171   : > { %1205 = vmatpush.bf16.msra.mxu1 %v1196_v28  ;;  %v598_v24 = vpop.f32.mrf.mxu0  ;;  %v622_v26 = vpop.f32.mrf.mxu1  ;;  %v1911_v28 = vld [vmem:[%s1870_s30] sm:$0x3]  ;;  %s2273_s30 = sshra.s32 %s1975_s13, 4  ;;  %s2274_s30 = int_to_ptr.hbm [resolvable:$true] %s2273_s30 }
 0x172   : > { %s2275_s7 = scalar_lea.hbm %s2274_s30, 64  ;;  %p2280_p0 = scmp.lt.s32.totalorder %s2274_s30, %s3147_s2 }
 0x173   : > { %p2276_p11 = scmp.ne.s32.totalorder %s2274_s30, %s2275_s7  ;;  %p2281_p1 = scmp.lt.s32.totalorder %s2279_s3, %s2275_s7 }
 0x174   : > { %v1743_v30 = vld.sshfl [vmem:[#allocation1] sm:$0xff pattern:$0x73625140]  ;;  %2135 = vmatmul.msk.bf16.vlgmr.msra.gmra.mxu2 %vm186_vm1, %v2586_v55  ;;  %2133 = vmatmul.msk.bf16.vlgmr.msra.gmra.mxu1 %vm186_vm1, %v2597_v59 }
 0x175   : > { %1780 = vst [vmem:[#allocation1] ss:$4 sm:$0xff] %v1778_v25  ;;  %1745 = vrot.lane.b32.xlu2 %v1743_v30, %s2356_s29  ;;  %2136 = vmatmul.msk.bf16.vlgmr.msra.gmra.mxu3 %vm186_vm1, %v2592_v58  ;;  %v602_v25 = vadd.f32 %v598_v24, %v580_v22  ;;  %p2277_p12 = pnand %p2276_p11, %p2426_p3  ;;  %p2282_p2 = por %p2281_p1, %p2280_p0 }
 0x177   : > { %v1348_v3 = vpop.permute.xlu2 %1347  ;;  %v626_v29 = vadd.f32 %v622_v26, %v602_v25  ;;  %p2278_p13 = pneg %p2277_p12 }
 0x178   : > { %v1350_v6 = vsel %vm190_vm0, %v1348_v3, 0  ;;  %v684_v35 = vpop.f32.mrf.mxu3 }
 0x179   : > { %1359 = vmatpush.bf16.msrb.mxu3 %v1350_v6  ;;  %v628_v23 = vrot.slane %v626_v29, 1  ;;  %v629_v33 = vrot.slane %v626_v29, 2  ;;  %v630_v34 = vrot.slane %v626_v29, 3  ;;  %v631_v36 = vrot.slane %v626_v29, 4  ;;  %642 = vst.msk [vmem:[%s2832_s24 + $0x1] sm:$0x1] %vm423_vm2, %v626_v29  ;;  %v600_v38 = vpop.f32.mrf.mxu0  ;;  %p2283_p4 = pnand %p2282_p2, %p2278_p13 }
 0x17a   : > { %v632_v0 = vrot.slane %v626_v29, 5  ;;  %v633_v46 = vrot.slane %v626_v29, 6  ;;  %v634_v49 = vrot.slane %v626_v29, 7  ;;  %v1655_v38 = vsel %vm190_vm0, %v2794_v42, 0 }
 0x17b   : > { %643 = vst.msk [vmem:[%s2832_s24 + $0x9] sm:$0x1] %vm423_vm2, %v628_v23 }
 0x17c   : > { %v1781_v52 = vld.sshfl [vmem:[#allocation1] sm:$0xff pattern:$0x73625140]  ;;  %644 = vst.msk [vmem:[%s2832_s24 + $0x11] sm:$0x1] %vm423_vm2, %v629_v33 }
 0x17d   : > { %1820 = vst [vmem:[#allocation1] ss:$4 sm:$0xff] %v2847_v47  ;;  %1783 = vrot.lane.b32.xlu2 %v1781_v52, %s2355_s25  ;;  %1446 = vmatpush.bf16.msra.mxu3 %v1437_v4  ;;  %v624_v52 = vpop.f32.mrf.mxu1 }
 0x17e   : > { %645 = vst.msk [vmem:[%s2832_s24 + $0x19] sm:$0x1] %vm423_vm2, %v630_v34 }
 0x17f   : > { %v1263_v62 = vpop.permute.xlu0 %1262  ;;  %v669_v30 = vpop.f32.mrf.mxu2  ;;  %646 = vst.msk [vmem:[%s2832_s24 + $0x21] sm:$0x1] %vm423_vm2, %v631_v36 }
 0x180   : > { %v1265_v2 = vsel %vm190_vm0, %v1263_v62, 0  ;;  %647 = vst.msk [vmem:[%s2832_s24 + $0x29] sm:$0x1] %vm423_vm2, %v632_v0  ;;  %v685_v60 = vadd.f32 %v684_v35, %v669_v30  ;;  %v1545_v62 = vsel %vm190_vm0, %v2749_v11, 0  ;;  %v686_v63 = vpop.f32.mrf.mxu3 }
 0x181   : > { %1274 = vmatpush.bf16.msrb.mxu0 %v1265_v2  ;;  %648 = vst.msk [vmem:[%s2832_s24 + $0x31] sm:$0x1] %vm423_vm2, %v633_v46 }
 0x182   : > { %649 = vst.msk [vmem:[%s2832_s24 + $0x39] sm:$0x1] %vm423_vm2, %v634_v49 }
 0x184   : > { %v1821_v57 = vld.sshfl [vmem:[#allocation1] sm:$0xff pattern:$0x73625140]  ;;  %2139 = vmatmul.msk.bf16.vlgmr.msrb.gmra.mxu2 %vm186_vm1, %v2548_v43  ;;  %2137 = vmatmul.msk.bf16.vlgmr.msrb.gmra.mxu0 %vm186_vm1, %v2635_v9 }
 0x185   : > { %1377 = vmatpush.bf16.msra.mxu0 %v1368_v1  ;;  %1823 = vrot.lane.b32.xlu1 %v1821_v57, %s2356_s29  ;;  %1844 = vst [vmem:[#allocation1] ss:$4 sm:$0xff] %v1842_v14  ;;  %v707_v1 = vpop.f32.mrf.mxu0  ;;  %v725_v3 = vpop.f32.mrf.mxu1 }
 0x186   : > { %2140 = vmatmul.msk.bf16.vlgmr.msrb.gmra.mxu3 %vm186_vm1, %v2537_v40  ;;  %v711_v2 = vadd.f32 %v707_v1, %v685_v60 }
 0x187   : > { %v1310_v31 = vpop.permute.xlu1 %1309  ;;  %v1412_v18 = vpop.permute.xlu2 %1411  ;;  %1554 = vmatpush.bf16.msrb.mxu3 %v1545_v62 }
 0x188   : > { %v1312_v13 = vsel %vm190_vm0, %v1310_v31, 0  ;;  %v1414_v20 = vsel %vm190_vm0, %v1412_v18, 0  ;;  %v671_v54 = vpop.f32.mrf.mxu2  ;;  %v729_v5 = vadd.f32 %v725_v3, %v711_v2  ;;  %v771_v51 = vpop.f32.mrf.mxu3 }
 0x189   : > { %1321 = vmatpush.bf16.msrb.mxu1 %v1312_v13  ;;  %1423 = vmatpush.bf16.msra.mxu2 %v1414_v20 }
 0x18c   : > { %v1845_v50 = vld.sshfl [vmem:[#allocation1] sm:$0xff pattern:$0x73625140]  ;;  %2138 = vmatmul.msk.bf16.vlgmr.msrb.gmra.mxu1 %vm186_vm1, %v2553_v44 }
 0x18d   : > { %1889 = vst [vmem:[#allocation1] ss:$4 sm:$0xff] %v2883_v19  ;;  %1847 = vrot.lane.b32.xlu2 %v1845_v50, %s2355_s25  ;;  %v709_v6 = vpop.f32.mrf.mxu0  ;;  %v727_v7 = vpop.f32.mrf.mxu1 }
 0x18f   : > { %v1457_v48 = vpop.permute.xlu2 %1456 }
 0x190   : > { %v1459_v53 = vsel %vm190_vm0, %v1457_v48, 0  ;;  %v747_v4 = vpop.f32.mrf.mxu2  ;;  %v773_v8 = vpop.f32.mrf.mxu3 }
 0x191   : > { %1468 = vmatpush.bf16.msrb.mxu0 %v1459_v53  ;;  %v751_v14 = vadd.f32 %v747_v4, %v729_v5  ;;  %v2250_v5 = vld [vmem:[%s3145_s0 + $0x4] sm:$0xf] }
 0x193   : > { %v775_v11 = vadd.f32 %v771_v51, %v751_v14 }
 0x194   : > { %v1890_v32 = vld.sshfl [vmem:[#allocation1] sm:$0xff pattern:$0x73625140]  ;;  %2143 = vmatmul.msk.bf16.vlgmr.msra.gmra.mxu2 %vm186_vm1, %v2597_v59  ;;  %2141 = vmatmul.msk.bf16.vlgmr.msra.gmra.mxu0 %vm186_vm1, %v2542_v41 }
 0x195   : > { %1892 = vrot.lane.b32.xlu0 %v1890_v32, %s2356_s29  ;;  %1913 = vst [vmem:[#allocation1] ss:$4 sm:$0xff] %v1911_v28  ;;  %v794_v31 = vpop.f32.mrf.mxu0 }
 0x196   : > { %2145 = vmatmul.msk.bf16.vlgmr.msra.gmra.mxu3 %vm186_vm1, %v2586_v55  ;;  %v798_v16 = vadd.f32 %v794_v31, %v775_v11 }
 0x197   : > { %v1388_v37 = vpop.permute.xlu0 %1387 }
 0x198   : > { %v1390_v39 = vsel %vm190_vm0, %v1388_v37, 0  ;;  %v749_v57 = vpop.f32.mrf.mxu2  ;;  %v887_v21 = vpop.f32.mrf.mxu3 }
 0x199   : > { %1399 = vmatpush.bf16.msra.mxu1 %v1390_v39  ;;  %v816_v17 = vpop.f32.mrf.mxu1 }
 0x19a   : > { %v820_v18 = vadd.f32 %v816_v17, %v798_v16 }
 0x19c   : > { %v1914_v56 = vld.sshfl [vmem:[#allocation1] sm:$0xff pattern:$0x73625140]  ;;  %2142 = vmatmul.msk.bf16.vlgmr.msra.gmra.mxu1 %vm186_vm1, %v2607_v61 }
 0x19d   : > { %1916 = vrot.lane.b32.xlu1 %v1914_v56, %s2355_s25  ;;  %v796_v30 = vpop.f32.mrf.mxu0 }
 0x1a0   : > { %v889_v35 = vpop.f32.mrf.mxu3 }
 0x1a1   : > { %v818_v23 = vpop.f32.mrf.mxu1  ;;  %v2253_v35 = vld [vmem:[%s3145_s0 + $0xc] sm:$0xf] }
 0x1a4   : > { %2146 = vmatmul.msk.bf16.vlgmr.msrb.gmra.mxu0 %vm186_vm1, %v2592_v58 }
 0x1a5   : > { %v902_v0 = vpop.f32.mrf.mxu0 }
 0x1a6   : > { %2149 = vmatmul.msk.bf16.vlgmr.msrb.gmra.mxu3 %vm186_vm1, %v2548_v43  ;;  %v903_v39 = vadd.f32 %v902_v0, %v887_v21 }
 0x1a7   : > { %v840_v20 = vpop.f32.mrf.mxu2 }
 0x1a8   : > { %v844_v43 = vadd.f32 %v840_v20, %v820_v18 }
 0x1aa   : > { %v846_v50 = vrot.slane %v844_v43, 1  ;;  %v847_v22 = vrot.slane %v844_v43, 2  ;;  %v848_v15 = vrot.slane %v844_v43, 3  ;;  %860 = vst.msk [vmem:[%s2832_s24 + $0x2] sm:$0x1] %vm423_vm2, %v844_v43  ;;  %v849_v25 = vrot.slane %v844_v43, 4 }
 0x1ab   : > { %v850_v29 = vrot.slane %v844_v43, 5  ;;  %v851_v32 = vrot.slane %v844_v43, 6  ;;  %v852_v33 = vrot.slane %v844_v43, 7  ;;  %v1804_v43 = vsel %vm190_vm0, %v2847_v47, 0 }
 0x1ac   : > { %861 = vst.msk [vmem:[%s2832_s24 + $0xa] sm:$0x1] %vm423_vm2, %v846_v50 }
 0x1ad   : > { %862 = vst.msk [vmem:[%s2832_s24 + $0x12] sm:$0x1] %vm423_vm2, %v847_v22  ;;  %v904_v53 = vpop.f32.mrf.mxu0 }
 0x1ae   : > { %863 = vst.msk [vmem:[%s2832_s24 + $0x1a] sm:$0x1] %vm423_vm2, %v848_v15  ;;  %v1873_v15 = vsel %vm190_vm0, %v2883_v19, 0 }
 0x1af   : > { %v1481_v27 = vpop.permute.xlu0 %1480  ;;  %864 = vst.msk [vmem:[%s2832_s24 + $0x22] sm:$0x1] %vm423_vm2, %v849_v25  ;;  %v842_v34 = vpop.f32.mrf.mxu2 }
 0x1b0   : > { %v1483_v13 = vsel %vm190_vm0, %v1481_v27, 0  ;;  %865 = vst.msk [vmem:[%s2832_s24 + $0x2a] sm:$0x1] %vm423_vm2, %v850_v29  ;;  %v2252_v29 = vld [vmem:[%s3145_s0 + $0x8] sm:$0xf] }
 0x1b1   : > { %1492 = vmatpush.bf16.msrb.mxu1 %v1483_v13  ;;  %866 = vst.msk [vmem:[%s2832_s24 + $0x32] sm:$0x1] %vm423_vm2, %v851_v32 }
 0x1b2   : > { %867 = vst.msk [vmem:[%s2832_s24 + $0x3a] sm:$0x1] %vm423_vm2, %v852_v33 }
 0x1b4   : > { %2147 = vmatmul.msk.bf16.vlgmr.msrb.gmra.mxu1 %vm186_vm1, %v2635_v9 }
 0x1b5   : > { %1595 = vmatpush.bf16.msra.mxu1 %v1586_v12 }
 0x1b7   : > { %v1528_v45 = vpop.permute.xlu1 %1527  ;;  %v1630_v24 = vpop.permute.xlu2 %1629 }
 0x1b8   : > { %v1530_v26 = vsel %vm190_vm0, %v1528_v45, 0  ;;  %v1632_v28 = vsel %vm190_vm0, %v1630_v24, 0  ;;  %v943_v46 = vpop.f32.mrf.mxu2  ;;  %v2251_v45 = vld [vmem:[%s3145_s0] sm:$0xf] }
 0x1b9   : > { %1539 = vmatpush.bf16.msrb.mxu2 %v1530_v26  ;;  %1641 = vmatpush.bf16.msra.mxu3 %v1632_v28 }
 0x1bc   : > { %2148 = vmatmul.msk.bf16.vlgmr.msrb.gmra.mxu2 %vm186_vm1, %v2553_v44  ;;  %2153 = vmatmul.msk.bf16.vlgmr.msra.gmra.mxu3 %vm186_vm1, %v2597_v59  ;;  %v925_v44 = vpop.f32.mrf.mxu1  ;;  %v1763_v59 = vsel %vm190_vm0, %v2813_v10, 0  ;;  %v989_v10 = vpop.f32.mrf.mxu0 }
 0x1bd   : > { %v929_v48 = vadd.f32 %v925_v44, %v903_v39 }
 0x1bf   : > { %v1566_v36 = vpop.permute.xlu0 %1565  ;;  %v965_v49 = vpop.f32.mrf.mxu3  ;;  %v947_v54 = vadd.f32 %v943_v46, %v929_v48 }
 0x1c0   : > { %v1568_v37 = vsel %vm190_vm0, %v1566_v36, 0  ;;  %v945_v60 = vpop.f32.mrf.mxu2  ;;  %v2254_v36 = vld [vmem:[%s3145_s0 + $0x14] sm:$0xf] }
 0x1c1   : > { %1577 = vmatpush.bf16.msra.mxu0 %v1568_v37 }
 0x1c4   : > { %2150 = vmatmul.msk.bf16.vlgmr.msra.gmra.mxu0 %vm186_vm1, %v2537_v40  ;;  %2151 = vmatmul.msk.bf16.vlgmr.msra.gmra.mxu1 %vm186_vm1, %v2542_v41  ;;  %v927_v56 = vpop.f32.mrf.mxu1  ;;  %v969_v40 = vadd.f32 %v965_v49, %v947_v54  ;;  %v991_v11 = vpop.f32.mrf.mxu0 }
 0x1c5   : > { %1664 = vmatpush.bf16.msrb.mxu0 %v1655_v38 }
 0x1c6   : > { %v993_v1 = vadd.f32 %v989_v10, %v969_v40 }
 0x1c7   : > { %v1606_v52 = vpop.permute.xlu1 %1605  ;;  %v967_v62 = vpop.f32.mrf.mxu3 }
 0x1c8   : > { %v1608_v42 = vsel %vm190_vm0, %v1606_v52, 0  ;;  %v2255_v52 = vld [vmem:[%s3145_s0 + $0x10] sm:$0xf] }
 0x1c9   : > { %1772 = vmatpush.bf16.msra.mxu0 %v1763_v59  ;;  %1617 = vmatpush.bf16.msra.mxu2 %v1608_v42  ;;  %v2256_v42 = vld [vmem:[%s3145_s0 + $0x18] sm:$0xf] }
 0x1cc   : > { %2152 = vmatmul.msk.bf16.vlgmr.msra.gmra.mxu2 %vm186_vm1, %v2607_v61  ;;  %v1012_v2 = vpop.f32.mrf.mxu1 }
 0x1cd   : > { %v1016_v3 = vadd.f32 %v1012_v2, %v993_v1 }
 0x1cf   : > { %v1746_v41 = vpop.permute.xlu2 %1745  ;;  %v1034_v4 = vpop.f32.mrf.mxu2 }
 0x1d0   : > { %v1748_v63 = vsel %vm190_vm0, %v1746_v41, 0  ;;  %v1038_v61 = vadd.f32 %v1034_v4, %v1016_v3 }
 0x1d1   : > { %1757 = vmatpush.bf16.msrb.mxu3 %v1748_v63 }
 0x1d4   : > { %2155 = vmatmul.msk.bf16.vlgmr.msrb.gmra.mxu0 %vm186_vm1, %v2586_v55  ;;  %2158 = vmatmul.msk.bf16.vlgmr.msrb.gmra.mxu3 %vm186_vm1, %v2250_v5  ;;  %v1014_v8 = vpop.f32.mrf.mxu1 }
 0x1d7   : > { %v1675_v51 = vpop.permute.xlu0 %1674  ;;  %v1784_v6 = vpop.permute.xlu2 %1783 }
 0x1d8   : > { %v1677_v14 = vsel %vm190_vm0, %v1675_v51, 0  ;;  %v1786_v7 = vsel %vm190_vm0, %v1784_v6, 0  ;;  %v1058_v57 = vpop.f32.mrf.mxu3  ;;  %v1036_v13 = vpop.f32.mrf.mxu2 }
 0x1d9   : > { %1686 = vmatpush.bf16.msrb.mxu1 %v1677_v14  ;;  %v1062_v55 = vadd.f32 %v1058_v57, %v1038_v61  ;;  %v1105_v22 = vpop.f32.mrf.mxu0  ;;  %v2257_v57 = vld [vmem:[%s3145_s0 + $0x1c] sm:$0xf]  ;;  %v2258_v13 = vld [vmem:[%s3145_s0 + $0x20] sm:$0xf] }
 0x1db   : > { %v1064_v27 = vrot.slane %v1062_v55, 1  ;;  %v1065_v31 = vrot.slane %v1062_v55, 2  ;;  %v1066_v12 = vrot.slane %v1062_v55, 3  ;;  %1078 = vst.msk [vmem:[%s2832_s24 + $0x3] sm:$0x1] %vm423_vm2, %v1062_v55  ;;  %v1067_v16 = vrot.slane %v1062_v55, 4 }
 0x1dc   : > { %2156 = vmatmul.msk.bf16.vlgmr.msrb.gmra.mxu1 %vm186_vm1, %v2592_v58  ;;  %v1068_v17 = vrot.slane %v1062_v55, 5  ;;  %v1069_v18 = vrot.slane %v1062_v55, 6  ;;  %v1070_v21 = vrot.slane %v1062_v55, 7  ;;  %v1120_v47 = vpop.f32.mrf.mxu1 }
 0x1dd   : > { %1795 = vmatpush.bf16.msra.mxu1 %v1786_v7  ;;  %1079 = vst.msk [vmem:[%s2832_s24 + $0xb] sm:$0x1] %vm423_vm2, %v1064_v27 }
 0x1de   : > { %1080 = vst.msk [vmem:[%s2832_s24 + $0x13] sm:$0x1] %vm423_vm2, %v1065_v31 }
 0x1df   : > { %v1699_v20 = vpop.permute.xlu1 %1698  ;;  %1081 = vst.msk [vmem:[%s2832_s24 + $0x1b] sm:$0x1] %vm423_vm2, %v1066_v12 }
 0x1e0   : > { %v1701_v50 = vsel %vm190_vm0, %v1699_v20, 0  ;;  %1082 = vst.msk [vmem:[%s2832_s24 + $0x23] sm:$0x1] %vm423_vm2, %v1067_v16  ;;  %v1060_v58 = vpop.f32.mrf.mxu3 }
 0x1e1   : > { %1710 = vmatpush.bf16.msrb.mxu2 %v1701_v50  ;;  %1083 = vst.msk [vmem:[%s2832_s24 + $0x2b] sm:$0x1] %vm423_vm2, %v1068_v17  ;;  %1882 = vmatpush.bf16.msrb.mxu1 %v1873_v15  ;;  %v1107_v28 = vpop.f32.mrf.mxu0 }
 0x1e2   : > { %1084 = vst.msk [vmem:[%s2832_s24 + $0x33] sm:$0x1] %vm423_vm2, %v1069_v18 }
 0x1e3   : > { %1085 = vst.msk [vmem:[%s2832_s24 + $0x3b] sm:$0x1] %vm423_vm2, %v1070_v21 }
 0x1e4   : > { %2157 = vmatmul.msk.bf16.vlgmr.msrb.gmra.mxu2 %vm186_vm1, %v2635_v9  ;;  %2159 = vmatmul.msk.bf16.vlgmr.msra.gmra.mxu0 %vm186_vm1, %v2251_v45  ;;  %v1122_v19 = vpop.f32.mrf.mxu1  ;;  %v1121_v9 = vadd.f32 %v1120_v47, %v1105_v22 }
 0x1e5   : > { %1813 = vmatpush.bf16.msra.mxu2 %v1804_v43 }
 0x1e7   : > { %v1848_v24 = vpop.permute.xlu2 %1847  ;;  %v1143_v25 = vpop.f32.mrf.mxu2 }
 0x1e8   : > { %v1850_v26 = vsel %vm190_vm0, %v1848_v24, 0  ;;  %v1161_v30 = vpop.f32.mrf.mxu3  ;;  %v1147_v23 = vadd.f32 %v1143_v25, %v1121_v9 }
 0x1e9   : > { %1859 = vmatpush.bf16.msrb.mxu0 %v1850_v26  ;;  %v1183_v33 = vpop.f32.mrf.mxu0 }
 0x1ea   : > { %v1165_v37 = vadd.f32 %v1161_v30, %v1147_v23 }
 0x1ec   : > { %2160 = vmatmul.msk.bf16.vlgmr.msra.gmra.mxu1 %vm186_vm1, %v2252_v29  ;;  %v1187_v0 = vadd.f32 %v1183_v33, %v1165_v37 }
 0x1ef   : > { %v1145_v32 = vpop.f32.mrf.mxu2 }
 0x1f0   : > { %v1163_v39 = vpop.f32.mrf.mxu3 }
 0x1f1   : > { %v1207_v34 = vpop.f32.mrf.mxu1  ;;  %v1185_v48 = vpop.f32.mrf.mxu0 }
 0x1f2   : > { %v1211_v46 = vadd.f32 %v1207_v34, %v1187_v0 }
 0x1f4   : > { %2161 = vmatmul.msk.bf16.vlgmr.msra.gmra.mxu2 %vm186_vm1, %v2253_v35  ;;  %2163 = vmatmul.msk.bf16.vlgmr.msrb.gmra.mxu0 %vm186_vm1, %v2254_v36 }
 0x1f7   : > { %v1824_v38 = vpop.permute.xlu1 %1823  ;;  %v1230_v59 = vpop.f32.mrf.mxu2 }
 0x1f8   : > { %v1826_v44 = vsel %vm190_vm0, %v1824_v38, 0  ;;  %v1234_v53 = vadd.f32 %v1230_v59, %v1211_v46  ;;  %v1252_v54 = vpop.f32.mrf.mxu3 }
 0x1f9   : > { %1835 = vmatpush.bf16.msra.mxu3 %v1826_v44  ;;  %v1209_v49 = vpop.f32.mrf.mxu1 }
 0x1fa   : > { %v1256_v56 = vadd.f32 %v1252_v54, %v1234_v53 }
 0x1fc   : > { %2162 = vmatmul.msk.bf16.vlgmr.msra.gmra.mxu3 %vm186_vm1, %v2255_v52  ;;  %2165 = vmatmul.msk.bf16.vlgmr.msrb.gmra.mxu1 %vm186_vm1, %v2256_v42 }
 0x1ff   : > { %v1232_v60 = vpop.f32.mrf.mxu2 }
 0x200   : > { %v1254_v5 = vpop.f32.mrf.mxu3 }
 0x201   : > { %v1276_v40 = vpop.f32.mrf.mxu0 }
 0x202   : > { %v1280_v62 = vadd.f32 %v1276_v40, %v1256_v56 }
 0x204   : > { %v1282_v41 = vrot.slane %v1280_v62, 1  ;;  %v1283_v63 = vrot.slane %v1280_v62, 2  ;;  %v1284_v10 = vrot.slane %v1280_v62, 3  ;;  %1296 = vst.msk [vmem:[%s2832_s24 + $0x4] sm:$0x1] %vm423_vm2, %v1280_v62  ;;  %v1285_v1 = vrot.slane %v1280_v62, 4 }
 0x205   : > { %v1286_v2 = vrot.slane %v1280_v62, 5  ;;  %v1287_v4 = vrot.slane %v1280_v62, 6  ;;  %v1288_v51 = vrot.slane %v1280_v62, 7 }
 0x206   : > { %1297 = vst.msk [vmem:[%s2832_s24 + $0xc] sm:$0x1] %vm423_vm2, %v1282_v41 }
 0x207   : > { %v1893_v3 = vpop.permute.xlu0 %1892  ;;  %1298 = vst.msk [vmem:[%s2832_s24 + $0x14] sm:$0x1] %vm423_vm2, %v1283_v63  ;;  %v1338_v6 = vpop.f32.mrf.mxu2 }
 0x208   : > { %v1895_v61 = vsel %vm190_vm0, %v1893_v3, 0  ;;  %1299 = vst.msk [vmem:[%s2832_s24 + $0x1c] sm:$0x1] %vm423_vm2, %v1284_v10 }
 0x209   : > { %1904 = vmatpush.bf16.msrb.mxu2 %v1895_v61  ;;  %1300 = vst.msk [vmem:[%s2832_s24 + $0x24] sm:$0x1] %vm423_vm2, %v1285_v1  ;;  %v1323_v14 = vpop.f32.mrf.mxu1  ;;  %v1278_v7 = vpop.f32.mrf.mxu0 }
 0x20a   : > { %1301 = vst.msk [vmem:[%s2832_s24 + $0x2c] sm:$0x1] %vm423_vm2, %v1286_v2  ;;  %v1361_v55 = vpop.f32.mrf.mxu3  ;;  %v1339_v16 = vadd.f32 %v1338_v6, %v1323_v14 }
 0x20b   : > { %1302 = vst.msk [vmem:[%s2832_s24 + $0x34] sm:$0x1] %vm423_vm2, %v1287_v4 }
 0x20c   : > { %2166 = vmatmul.msk.bf16.vlgmr.msrb.gmra.mxu2 %vm186_vm1, %v2257_v57  ;;  %1303 = vst.msk [vmem:[%s2832_s24 + $0x3c] sm:$0x1] %vm423_vm2, %v1288_v51  ;;  %v1365_v21 = vadd.f32 %v1361_v55, %v1339_v16 }
 0x20f   : > { %v1917_v11 = vpop.permute.xlu1 %1916  ;;  %v1340_v27 = vpop.f32.mrf.mxu2 }
 0x210   : > { %v1919_v8 = vsel %vm190_vm0, %v1917_v11, 0 }
 0x211   : > { %1928 = vmatpush.bf16.msrb.mxu3 %v1919_v8  ;;  %v1325_v31 = vpop.f32.mrf.mxu1  ;;  %v1379_v12 = vpop.f32.mrf.mxu0 }
 0x212   : > { %v1363_v17 = vpop.f32.mrf.mxu3  ;;  %v1383_v50 = vadd.f32 %v1379_v12, %v1365_v21 }
 0x214   : > { %2167 = vmatmul.msk.bf16.vlgmr.msrb.gmra.mxu3 %vm186_vm1, %v2258_v13 }
 0x217   : > { %v1425_v18 = vpop.f32.mrf.mxu2 }
 0x219   : > { %v1401_v20 = vpop.f32.mrf.mxu1  ;;  %v1381_v43 = vpop.f32.mrf.mxu0 }
 0x21a   : > { %v1448_v58 = vpop.f32.mrf.mxu3  ;;  %v1405_v45 = vadd.f32 %v1401_v20, %v1383_v50 }
 0x21c   : > { %v1429_v24 = vadd.f32 %v1425_v18, %v1405_v45 }
 0x21e   : > { %v1452_v28 = vadd.f32 %v1448_v58, %v1429_v24 }
 0x21f   : > { %v1427_v22 = vpop.f32.mrf.mxu2 }
 0x221   : > { %v1403_v15 = vpop.f32.mrf.mxu1  ;;  %v1470_v47 = vpop.f32.mrf.mxu0 }
 0x222   : > { %v1450_v25 = vpop.f32.mrf.mxu3  ;;  %v1474_v19 = vadd.f32 %v1470_v47, %v1452_v28 }
 0x229   : > { %v1472_v26 = vpop.f32.mrf.mxu0 }
 0x22a   : > { %v1556_v29 = vpop.f32.mrf.mxu3 }
 0x231   : > { %v1494_v9 = vpop.f32.mrf.mxu1 }
 0x232   : > { %v1498_v30 = vadd.f32 %v1494_v9, %v1474_v19  ;;  %v1558_v37 = vpop.f32.mrf.mxu3 }
 0x234   : > { %v1500_v32 = vrot.slane %v1498_v30, 1  ;;  %v1501_v23 = vrot.slane %v1498_v30, 2  ;;  %v1502_v33 = vrot.slane %v1498_v30, 3  ;;  %1514 = vst.msk [vmem:[%s2832_s24 + $0x5] sm:$0x1] %vm423_vm2, %v1498_v30  ;;  %v1503_v34 = vrot.slane %v1498_v30, 4 }
 0x235   : > { %v1504_v35 = vrot.slane %v1498_v30, 5  ;;  %v1505_v36 = vrot.slane %v1498_v30, 6  ;;  %v1506_v0 = vrot.slane %v1498_v30, 7 }
 0x236   : > { %1515 = vst.msk [vmem:[%s2832_s24 + $0xd] sm:$0x1] %vm423_vm2, %v1500_v32 }
 0x237   : > { %1516 = vst.msk [vmem:[%s2832_s24 + $0x15] sm:$0x1] %vm423_vm2, %v1501_v23 }
 0x238   : > { %1517 = vst.msk [vmem:[%s2832_s24 + $0x1d] sm:$0x1] %vm423_vm2, %v1502_v33 }
 0x239   : > { %1518 = vst.msk [vmem:[%s2832_s24 + $0x25] sm:$0x1] %vm423_vm2, %v1503_v34  ;;  %v1496_v38 = vpop.f32.mrf.mxu1 }
 0x23a   : > { %1519 = vst.msk [vmem:[%s2832_s24 + $0x2d] sm:$0x1] %vm423_vm2, %v1504_v35 }
 0x23b   : > { %1520 = vst.msk [vmem:[%s2832_s24 + $0x35] sm:$0x1] %vm423_vm2, %v1505_v36 }
 0x23c   : > { %1521 = vst.msk [vmem:[%s2832_s24 + $0x3d] sm:$0x1] %vm423_vm2, %v1506_v0 }
 0x23f   : > { %v1541_v39 = vpop.f32.mrf.mxu2  ;;  %v1643_v44 = vpop.f32.mrf.mxu3 }
 0x240   : > { %v1557_v53 = vadd.f32 %v1556_v29, %v1541_v39 }
 0x241   : > { %v1579_v46 = vpop.f32.mrf.mxu0  ;;  %v1597_v59 = vpop.f32.mrf.mxu1 }
 0x242   : > { %v1583_v60 = vadd.f32 %v1579_v46, %v1557_v53 }
 0x244   : > { %v1601_v40 = vadd.f32 %v1597_v59, %v1583_v60 }
 0x247   : > { %v1543_v48 = vpop.f32.mrf.mxu2  ;;  %v1645_v49 = vpop.f32.mrf.mxu3 }
 0x249   : > { %v1581_v52 = vpop.f32.mrf.mxu0  ;;  %v1599_v42 = vpop.f32.mrf.mxu1 }
 0x24f   : > { %v1619_v54 = vpop.f32.mrf.mxu2 }
 0x250   : > { %v1623_v1 = vadd.f32 %v1619_v54, %v1601_v40 }
 0x251   : > { %v1666_v56 = vpop.f32.mrf.mxu0 }
 0x252   : > { %v1647_v2 = vadd.f32 %v1643_v44, %v1623_v1 }
 0x254   : > { %v1670_v61 = vadd.f32 %v1666_v56, %v1647_v2 }
 0x257   : > { %v1621_v62 = vpop.f32.mrf.mxu2  ;;  %v1759_v41 = vpop.f32.mrf.mxu3 }
 0x259   : > { %v1688_v63 = vpop.f32.mrf.mxu1  ;;  %v1668_v10 = vpop.f32.mrf.mxu0 }
 0x25a   : > { %v1692_v51 = vadd.f32 %v1688_v63, %v1670_v61 }
 0x25f   : > { %v1761_v3 = vpop.f32.mrf.mxu3 }
 0x261   : > { %v1690_v4 = vpop.f32.mrf.mxu1  ;;  %v1774_v5 = vpop.f32.mrf.mxu0 }
 0x262   : > { %v1775_v15 = vadd.f32 %v1774_v5, %v1759_v41 }
 0x267   : > { %v1712_v6 = vpop.f32.mrf.mxu2 }
 0x268   : > { %v1716_v14 = vadd.f32 %v1712_v6, %v1692_v51 }
 0x269   : > { %v1797_v7 = vpop.f32.mrf.mxu1  ;;  %v1776_v57 = vpop.f32.mrf.mxu0 }
 0x26a   : > { %v1718_v11 = vrot.slane %v1716_v14, 1  ;;  %v1719_v55 = vrot.slane %v1716_v14, 2  ;;  %v1720_v8 = vrot.slane %v1716_v14, 3  ;;  %1732 = vst.msk [vmem:[%s2832_s24 + $0x6] sm:$0x1] %vm423_vm2, %v1716_v14  ;;  %v1721_v27 = vrot.slane %v1716_v14, 4 }
 0x26b   : > { %v1722_v31 = vrot.slane %v1716_v14, 5  ;;  %v1723_v12 = vrot.slane %v1716_v14, 6  ;;  %v1724_v13 = vrot.slane %v1716_v14, 7  ;;  %v1801_v47 = vadd.f32 %v1797_v7, %v1775_v15 }
 0x26c   : > { %1733 = vst.msk [vmem:[%s2832_s24 + $0xe] sm:$0x1] %vm423_vm2, %v1718_v11 }
 0x26d   : > { %1734 = vst.msk [vmem:[%s2832_s24 + $0x16] sm:$0x1] %vm423_vm2, %v1719_v55 }
 0x26e   : > { %1735 = vst.msk [vmem:[%s2832_s24 + $0x1e] sm:$0x1] %vm423_vm2, %v1720_v8 }
 0x26f   : > { %1736 = vst.msk [vmem:[%s2832_s24 + $0x26] sm:$0x1] %vm423_vm2, %v1721_v27  ;;  %v1714_v16 = vpop.f32.mrf.mxu2 }
 0x270   : > { %1737 = vst.msk [vmem:[%s2832_s24 + $0x2e] sm:$0x1] %vm423_vm2, %v1722_v31 }
 0x271   : > { %1738 = vst.msk [vmem:[%s2832_s24 + $0x36] sm:$0x1] %vm423_vm2, %v1723_v12  ;;  %v1799_v17 = vpop.f32.mrf.mxu1  ;;  %v1861_v18 = vpop.f32.mrf.mxu0 }
 0x272   : > { %1739 = vst.msk [vmem:[%s2832_s24 + $0x3e] sm:$0x1] %vm423_vm2, %v1724_v13 }
 0x277   : > { %v1815_v20 = vpop.f32.mrf.mxu2 }
 0x278   : > { %v1819_v24 = vadd.f32 %v1815_v20, %v1801_v47 }
 0x279   : > { %v1884_v43 = vpop.f32.mrf.mxu1  ;;  %v1863_v21 = vpop.f32.mrf.mxu0 }
 0x27f   : > { %v1837_v50 = vpop.f32.mrf.mxu3  ;;  %v1817_v58 = vpop.f32.mrf.mxu2 }
 0x280   : > { %v1841_v25 = vadd.f32 %v1837_v50, %v1819_v24 }
 0x281   : > { %v1886_v22 = vpop.f32.mrf.mxu1 }
 0x282   : > { %v1865_v28 = vadd.f32 %v1861_v18, %v1841_v25 }
 0x284   : > { %v1888_v19 = vadd.f32 %v1884_v43, %v1865_v28 }
 0x287   : > { %v1839_v45 = vpop.f32.mrf.mxu3 }
 0x28f   : > { %v1906_v26 = vpop.f32.mrf.mxu2 }
 0x290   : > { %v1910_v29 = vadd.f32 %v1906_v26, %v1888_v19 }
 0x297   : > { %v1930_v9 = vpop.f32.mrf.mxu3  ;;  %v1908_v30 = vpop.f32.mrf.mxu2 }
 0x298   : > { %v1934_v32 = vadd.f32 %v1930_v9, %v1910_v29 }
 0x29a   : > { %v1936_v23 = vrot.slane %v1934_v32, 1  ;;  %v1937_v33 = vrot.slane %v1934_v32, 2  ;;  %v1938_v34 = vrot.slane %v1934_v32, 3  ;;  %1950 = vst.msk [vmem:[%s2832_s24 + $0x7] sm:$0x1] %vm423_vm2, %v1934_v32  ;;  %v1939_v35 = vrot.slane %v1934_v32, 4 }
 0x29b   : > { %v1940_v36 = vrot.slane %v1934_v32, 5  ;;  %v1941_v37 = vrot.slane %v1934_v32, 6  ;;  %v1942_v0 = vrot.slane %v1934_v32, 7 }
 0x29c   : > { %1951 = vst.msk [vmem:[%s2832_s24 + $0xf] sm:$0x1] %vm423_vm2, %v1936_v23 }
 0x29d   : > { %1952 = vst.msk [vmem:[%s2832_s24 + $0x17] sm:$0x1] %vm423_vm2, %v1937_v33 }
 0x29e   : > { %1953 = vst.msk [vmem:[%s2832_s24 + $0x1f] sm:$0x1] %vm423_vm2, %v1938_v34 }
 0x29f   : > { %1954 = vst.msk [vmem:[%s2832_s24 + $0x27] sm:$0x1] %vm423_vm2, %v1939_v35  ;;  %v1932_v38 = vpop.f32.mrf.mxu3 }
 0x2a0   : > { %1955 = vst.msk [vmem:[%s2832_s24 + $0x2f] sm:$0x1] %vm423_vm2, %v1940_v36 }
 0x2a1   : > { %1956 = vst.msk [vmem:[%s2832_s24 + $0x37] sm:$0x1] %vm423_vm2, %v1941_v37 }
 0x2a2   : > { %1957 = vst.msk [vmem:[%s2832_s24 + $0x3f] sm:$0x1] %vm423_vm2, %v1942_v0 }
 0x2a3   : > { %2286 = shalt.err (!%p2283_p4)
}
 0x2a4   : > { %s2357_s8 = smov 128   ;;  %s2358_s24 = smov 256  }
 0x2a5   : > { %s2359_s18 = smov 8  }
 0x2a6   : > { %2174 = dma.vmem_to_hbm [thread:$0]  (%p2426_p3), %s1973_s12, 1024, %s1975_s13, %s1959_s28, %s2357_s8, %s2358_s24, %s2359_s18  }
 0x2a7 PF: > { %p2180_p5 = scmp.ge.s32.totalorder %s2353_s16, 2  ;;  %s1989_s5 = sand.u32 1, %s2325_s9  }
 0x2a8   : > { %s1990_s21 = scalar_lea.sflag [#allocation3], %s1989_s5 }
 0x2a9   : > { %p2177_p6 = pnand %p2180_p5, %p2435_p8 }
 0x2ab   : > { %p2178_p7 = pneg %p2177_p6 }
 0x2ad   : > { %2320 = dma.done.wait (%p2178_p7), %s1990_s21, 1024  }
 0x2ae   : > { %2322 = vsyncadd (%p2178_p7), %s1990_s21, 4294966272  ;;  %s15_s16 = sadd.s32 1, %s2353_s16   ;;  %s3152_s9 = smov %s2329_s10 }
 0x2af   : > { %p12_p9 = scmp.ge.s32.totalorder %s15_s16, 6   ;;  %s3153_s10 = smov %s2333_s11 }
 0x2b0   : > { %s3154_s11 = smov %s2444_s27  ;;  %s3155_s12 = smov %s2345_s14 }
 0x2b1   : > { %s3156_s13 = smov %s2349_s15  ;;  %s3157_s14 = smov %s3160_s19 }
 0x2b2   : > { %s3158_s15 = smov %s3164_s20  ;;  %14 = sbr.rel (!%p12_p9) target bundleno = 5 (0x5), region = 81 }
 0x2b7   :  { %1996 = vsyncpa [#allocation3], 1 }
 0x2b8   :  { %1998 = vsyncpa [#allocation3 + $0x1], 1 }

</bundles_post_ra>
